<compile_context>
chip_gen: v5e
topology: v5e:2x2
jax: 0.10.0
libtpu: 0.0.40
codegen_flags: <defaults>
</compile_context>

<pallas_src>
import functools

import jax
import jax.numpy as jnp
from jax.experimental import pallas as pl
from jax.experimental.pallas import tpu as pltpu


# ---------------- small helpers ----------------

def _pick_tm(m, tm_max=512):
    """Largest multiple-of-8 divisor of m (<= tm_max); prefer >=2 grid steps so both
    v7x TensorCores get work. Falls back to a single full-M block (always legal)."""
    cands = [d for d in range(8, min(tm_max, m) + 1, 8) if m % d == 0]
    if not cands:
        return m
    two_step = [d for d in cands if m // d >= 2]
    return max(two_step) if two_step else max(cands)


def _vmem_limit(step_bytes, resident_bytes):
    """2x (double-buffered) per-step blocks + weights with constant index_map
    (resident, not re-DMA'd) + 4 MiB headroom; floor at the 32 MiB default, cap at
    48 MiB so v7x (64 MiB physical VMEM) keeps compiler headroom."""
    need = 2 * step_bytes + resident_bytes + (4 << 20)
    return int(min(48 << 20, max(32 << 20, need)))


def _pad_cols(w, n):
    return jnp.pad(w, ((0, 0), (0, n - w.shape[1])))


def _pad_rows(w, n):
    return jnp.pad(w, ((0, n - w.shape[0]), (0, 0)))


def _pad_vec(v, n):
    return jnp.pad(v, (0, n - v.shape[0]))


# ---------------- Pallas kernels ----------------

def _gemm_bias_act_kernel(x_ref, w_ref, b_ref, o_ref, *, relu):
    # x: (tm, K) bf16   w: (K, N) bf16 (BN scale pre-folded)   b: (1, N) f32
    y = jnp.dot(x_ref[...], w_ref[...], preferred_element_type=jnp.float32)
    y = y + b_ref[...]
    if relu:
        y = jnp.maximum(y, 0.0)
    o_ref[...] = y.astype(o_ref.dtype)


def _conv3x3_kernel(x_ref, w_ref, b_ref, o_ref, *, H, Wp):
    # Direct 3x3 / stride-1 / pad-1 conv on one image, no im2col.
    # x:  (1, (H+3)*Wp, C)  bf16  -- spatially padded image, rows flattened
    # w:  (9, C, Cout)      bf16  -- per-tap weights, BN scale folded, block-diag groups
    # b:  (1, Cout)         f32
    # o:  (1, H*Wp, Cout)   bf16  -- row h*Wp+w is out[h, w]; w >= W rows are junk
    L = H * Wp
    Cout = w_ref.shape[2]
    acc = jnp.zeros((L, Cout), jnp.float32)
    for dy in range(3):
        for dx in range(3):
            s = dy * Wp + dx
            acc = acc + jnp.dot(x_ref[0, s:s + L, :], w_ref[dy * 3 + dx],
                                preferred_element_type=jnp.float32)
    y = jnp.maximum(acc + b_ref[...], 0.0)
    o_ref[0] = y.astype(o_ref.dtype)


def _maxpool_kernel(p_ref, o_ref, *, taps, C):
    # p: (tm, taps*C) bf16 (lane-dense) -> o: (tm, C). Max over aligned lane slices.
    acc = p_ref[:, 0:C]
    for t in range(1, taps):
        acc = jnp.maximum(acc, p_ref[:, t * C:(t + 1) * C])
    o_ref[...] = acc


def _tail_pool_kernel(y_ref, id_ref, w3_ref, wd_ref, b_ref, o_ref, *, inv_hw):
    # Fused: c3 1x1 + BN  +  1x1 projection shortcut + BN  +  add + ReLU
    #        + global average pool (f32) for one image.
    z = jnp.dot(y_ref[0], w3_ref[...], preferred_element_type=jnp.float32)
    z = z + jnp.dot(id_ref[0], wd_ref[...], preferred_element_type=jnp.float32)
    z = jnp.maximum(z + b_ref[...], 0.0)
    o_ref[0] = jnp.sum(z, axis=0, keepdims=True) * inv_hw


# ---------------- wrappers ----------------

def gemm_bias_act(x, w, bias, *, relu, out_dtype, use_pallas, tm_max=512):
    """y = act(x @ w + bias).  x: [M, K], w: [K, N] (BN scale folded), bias: [N]."""
    M, K = x.shape
    N = w.shape[1]
    xb = x.astype(jnp.bfloat16)
    wb = w.astype(jnp.bfloat16)
    b = bias.reshape(1, N).astype(jnp.float32)
    if not use_pallas:
        y = jnp.dot(xb, wb, preferred_element_type=jnp.float32) + b
        if relu:
            y = jnp.maximum(y, 0.0)
        return y.astype(out_dtype)

    tm = _pick_tm(M, tm_max)
    step = tm * K * 2 + tm * N * jnp.dtype(out_dtype).itemsize
    resident = K * N * 2 + N * 4
    return pl.pallas_call(
        functools.partial(_gemm_bias_act_kernel, relu=relu),
        out_shape=jax.ShapeDtypeStruct((M, N), out_dtype),
        grid=(M // tm,),
        in_specs=[
            pl.BlockSpec((tm, K), lambda i: (i, 0)),
            pl.BlockSpec((K, N), lambda i: (0, 0)),
            pl.BlockSpec((1, N), lambda i: (0, 0)),
        ],
        out_specs=pl.BlockSpec((tm, N), lambda i: (i, 0)),
        compiler_params=pltpu.CompilerParams(
            dimension_semantics=("parallel",),
            vmem_limit_bytes=_vmem_limit(step, resident)),
    )(xb, wb, b)


def conv3x3_direct(x_nhwc, w_taps, bias, *, use_pallas):
    """Direct 3x3 / stride 1 / pad 1 conv + bias + ReLU, no im2col.
    x: (N, H, W, C) bf16; w_taps: (9, C, Cout) bf16 (BN folded); bias: (Cout,) f32."""
    N, H, W, C = x_nhwc.shape
    Cout = w_taps.shape[2]
    Wp = W + 2
    # pad: H by (1, 2) (the extra bottom row lets every tap load a full H*Wp slab),
    # W by (1, 1); zeros == conv padding.
    xp = jnp.pad(x_nhwc.astype(jnp.bfloat16), ((0, 0), (1, 2), (1, 1), (0, 0)))
    b = bias.reshape(1, Cout).astype(jnp.float32)
    wb = w_taps.astype(jnp.bfloat16)

    if not use_pallas:
        acc = jnp.zeros((N, H, W, Cout), jnp.float32)
        for dy in range(3):
            for dx in range(3):
                xt = xp[:, dy:dy + H, dx:dx + W, :]
                acc = acc + jnp.einsum("nhwc,cd->nhwd", xt, wb[dy * 3 + dx],
                                       preferred_element_type=jnp.float32)
        y = jnp.maximum(acc + bias.reshape(1, 1, 1, Cout), 0.0)
        return y.astype(jnp.bfloat16)

    xflat = xp.reshape(N, (H + 3) * Wp, C)            # free row-major reshape
    L = H * Wp
    step = (H + 3) * Wp * C * 2 + L * Cout * 2
    resident = 9 * C * Cout * 2 + Cout * 4
    out = pl.pallas_call(
        functools.partial(_conv3x3_kernel, H=H, Wp=Wp),
        out_shape=jax.ShapeDtypeStruct((N, L, Cout), jnp.bfloat16),
        grid=(N,),
        in_specs=[
            pl.BlockSpec((1, (H + 3) * Wp, C), lambda n: (n, 0, 0)),
            pl.BlockSpec((9, C, Cout), lambda n: (0, 0, 0)),
            pl.BlockSpec((1, Cout), lambda n: (0, 0)),
        ],
        out_specs=pl.BlockSpec((1, L, Cout), lambda n: (n, 0, 0)),
        compiler_params=pltpu.CompilerParams(
            dimension_semantics=("parallel",),
            vmem_limit_bytes=_vmem_limit(step, resident)),
    )(xflat, wb, b)
    # drop the horizontal-pad ("phantom") output columns
    return out.reshape(N, H, Wp, Cout)[:, :, :W, :]


def im2col(x_nhwc, kh, kw, stride, pad, pad_value=0.0):
    """Patch extraction (plain-JAX glue), on bf16 inputs.
    Returns ([N*Ho*Wo, kh*kw, C], Ho, Wo)."""
    N, H, W, C = x_nhwc.shape
    xp = jnp.pad(x_nhwc, ((0, 0), (pad, pad), (pad, pad), (0, 0)),
                 constant_values=pad_value)
    Ho = (H + 2 * pad - kh) // stride + 1
    Wo = (W + 2 * pad - kw) // stride + 1
    cols = []
    for i in range(kh):
        for j in range(kw):
            cols.append(xp[:,
                           i: i + (Ho - 1) * stride + 1: stride,
                           j: j + (Wo - 1) * stride + 1: stride,
                           :])
    p = jnp.stack(cols, axis=3)                       # [N, Ho, Wo, kh*kw, C]
    return p.reshape(N * Ho * Wo, kh * kw, C), Ho, Wo


def maxpool(x_nhwc, k, stride, pad, use_pallas, tm_max=512):
    N, H, W, C = x_nhwc.shape
    neg_inf = float("-inf")
    patches, Ho, Wo = im2col(x_nhwc, k, k, stride, pad, pad_value=neg_inf)
    M = N * Ho * Wo
    if not use_pallas:
        y = jnp.max(patches, axis=1)
    else:
        p2 = patches.reshape(M, k * k * C)            # lane-dense last dim
        tm = _pick_tm(M, tm_max)
        y = pl.pallas_call(
            functools.partial(_maxpool_kernel, taps=k * k, C=C),
            out_shape=jax.ShapeDtypeStruct((M, C), x_nhwc.dtype),
            grid=(M // tm,),
            in_specs=[pl.BlockSpec((tm, k * k * C), lambda i: (i, 0))],
            out_specs=pl.BlockSpec((tm, C), lambda i: (i, 0)),
            compiler_params=pltpu.CompilerParams(
                dimension_semantics=("parallel",)),
        )(p2)
    return y.reshape(N, Ho, Wo, C)


def tail_pool(y, identity, w3, wd, bias, *, use_pallas):
    """Fused c3(1x1)+BN + shortcut(1x1)+BN + add + ReLU + global avg pool + flatten.
    y: (N, HW, K3) bf16; identity: (N, HW, Kd) bf16; returns (N, Cout) f32."""
    N, HW, K3 = y.shape
    Kd = identity.shape[2]
    Cout = w3.shape[1]
    yb = y.astype(jnp.bfloat16)
    idb = identity.astype(jnp.bfloat16)
    w3b = w3.astype(jnp.bfloat16)
    wdb = wd.astype(jnp.bfloat16)
    b = bias.reshape(1, Cout).astype(jnp.float32)
    if not use_pallas:
        z = (jnp.einsum("nmk,kc->nmc", yb, w3b, preferred_element_type=jnp.float32)
             + jnp.einsum("nmk,kc->nmc", idb, wdb, preferred_element_type=jnp.float32))
        z = jnp.maximum(z + b[None], 0.0)
        return jnp.mean(z, axis=1)

    step = HW * (K3 + Kd) * 2 + Cout * 4
    resident = (K3 + Kd) * Cout * 2 + Cout * 4
    out = pl.pallas_call(
        functools.partial(_tail_pool_kernel, inv_hw=1.0 / float(HW)),
        out_shape=jax.ShapeDtypeStruct((N, 1, Cout), jnp.float32),
        grid=(N,),
        in_specs=[
            pl.BlockSpec((1, HW, K3), lambda n: (n, 0, 0)),
            pl.BlockSpec((1, HW, Kd), lambda n: (n, 0, 0)),
            pl.BlockSpec((K3, Cout), lambda n: (0, 0)),
            pl.BlockSpec((Kd, Cout), lambda n: (0, 0)),
            pl.BlockSpec((1, Cout), lambda n: (0, 0)),
        ],
        out_specs=pl.BlockSpec((1, 1, Cout), lambda n: (n, 0, 0)),
        compiler_params=pltpu.CompilerParams(
            dimension_semantics=("parallel",),
            vmem_limit_bytes=_vmem_limit(step, resident)),
    )(yb, idb, w3b, wdb, b)
    return out[:, 0, :]


# ---------------- parameter construction (deterministic, synthetic) ----------------

def make_conv_w(key, kh, kw, cin, cout):
    fan_in = kh * kw * cin
    w = jax.random.normal(key, (kh * kw * cin, cout)) / jnp.sqrt(float(fan_in))
    return w.astype(jnp.float32)


def make_grouped_conv_w(key, kh, kw, cin, cout, groups):
    """Per-tap block-diagonal dense [kh*kw, cin, cout] equivalent of a grouped conv:
    keeps the cardinality-32 grouped 3x3 as lane-dense GEMMs."""
    cin_g, cout_g = cin // groups, cout // groups
    fan_in = kh * kw * cin_g
    wg = jax.random.normal(key, (groups, kh * kw, cin_g, cout_g)) / jnp.sqrt(float(fan_in))
    w = jnp.zeros((kh * kw, cin, cout), jnp.float32)
    for g in range(groups):
        w = w.at[:, g * cin_g:(g + 1) * cin_g,
                 g * cout_g:(g + 1) * cout_g].set(wg[g].astype(jnp.float32))
    return w                                            # (kh*kw, cin, cout)


def make_bn(key, c, eps=1e-5):
    k1, k2, k3, k4 = jax.random.split(key, 4)
    gamma = jax.random.uniform(k1, (c,), minval=0.5, maxval=1.5)
    beta = jax.random.normal(k2, (c,)) * 0.1
    mean = jax.random.normal(k3, (c,)) * 0.1
    var = jax.random.uniform(k4, (c,), minval=0.5, maxval=1.5)
    scale = gamma / jnp.sqrt(var + eps)
    shift = beta - mean * scale
    return scale.astype(jnp.float32), shift.astype(jnp.float32)


def make_params(key):
    """ResNeXt-50 (32x4d) stem + stage-1 bottleneck params with BN scale folded into
    the weights and 64-channel tensors lane-padded to 128 (zero channels/rows)."""
    ks = jax.random.split(key, 10)
    p = {}
    # stem 7x7/2: 3 -> 64, output lane-padded to 128
    w = make_conv_w(ks[0], 7, 7, 3, 64)
    s, b = make_bn(ks[1], 64)
    p["stem_w"] = _pad_cols(w * s[None, :], 128).astype(jnp.bfloat16)   # (147, 128)
    p["stem_b"] = _pad_vec(b, 128)                                       # (128,)
    # c1 1x1: 64 (lane-padded 128) -> 128
    w = make_conv_w(ks[2], 1, 1, 64, 128)
    s, b = make_bn(ks[3], 128)
    p["c1_w"] = _pad_rows(w * s[None, :], 128).astype(jnp.bfloat16)      # (128, 128)
    p["c1_b"] = b
    # c2 3x3 grouped (cardinality 32): 128 -> 128, per-tap block-diag dense
    w = make_grouped_conv_w(ks[4], 3, 3, 128, 128, 32)                   # (9, 128, 128)
    s, b = make_bn(ks[5], 128)
    p["c2_w"] = (w * s[None, None, :]).astype(jnp.bfloat16)
    p["c2_b"] = b
    # c3 1x1: 128 -> 256 and projection shortcut 1x1: 64 (padded 128) -> 256;
    # their BN shifts are summed (the tail kernel adds them once).
    w3 = make_conv_w(ks[6], 1, 1, 128, 256)
    s3, b3 = make_bn(ks[7], 256)
    wd = make_conv_w(ks[8], 1, 1, 64, 256)
    sd, bd = make_bn(ks[9], 256)
    p["c3_w"] = (w3 * s3[None, :]).astype(jnp.bfloat16)                  # (128, 256)
    p["ds_w"] = _pad_rows(wd * sd[None, :], 128).astype(jnp.bfloat16)    # (128, 256)
    p["tail_b"] = b3 + bd
    return p


# ---------------- forward (ResNextBottom.forward) ----------------

def resnext_bottom_forward(x_nchw, p, use_pallas=True):
    # NCHW -> NHWC, cast bf16 BEFORE any patch extraction / padding.
    x = jnp.transpose(x_nchw, (0, 2, 3, 1)).astype(jnp.bfloat16)
    N = x.shape[0]

    # stem: conv 7x7/2 + BN + ReLU (im2col GEMM, 128-lane output)
    patches, Ho, Wo = im2col(x, 7, 7, 2, 3)
    xs = patches.reshape(N * Ho * Wo, 7 * 7 * x.shape[3])
    y = gemm_bias_act(xs, p["stem_w"], p["stem_b"], relu=True,
                      out_dtype=jnp.bfloat16, use_pallas=use_pallas)
    x = y.reshape(N, Ho, Wo, 128)

    # maxpool 3x3/2 pad 1 (-inf padded, lane-dense patch layout)
    x = maxpool(x, 3, 2, 1, use_pallas)
    _, H, W, C = x.shape
    identity = x.reshape(N, H * W, C)

    # ResNeXt bottleneck block (cardinality = 32)
    y = gemm_bias_act(identity.reshape(N * H * W, C), p["c1_w"], p["c1_b"], relu=True,
                      out_dtype=jnp.bfloat16, use_pallas=use_pallas)
    y = conv3x3_direct(y.reshape(N, H, W, -1), p["c2_w"], p["c2_b"],
                       use_pallas=use_pallas)                     # (N, H, W, 128) bf16
    y = y.reshape(N, H * W, -1)

    # c3 + BN, shortcut + BN, add, ReLU, adaptive avg pool to 1x1, flatten -> [N, 256]
    return tail_pool(y, identity, p["c3_w"], p["ds_w"], p["tail_b"],
                     use_pallas=use_pallas)


if __name__ == "__main__":
    x = jax.random.normal(jax.random.PRNGKey(0), (2, 3, 16, 16),
                          dtype=jnp.float32)          # NCHW, like the PyTorch module
    params = make_params(jax.random.PRNGKey(42))

    fwd = jax.jit(functools.partial(resnext_bottom_forward, use_pallas=True))
    fwd_ref = jax.jit(functools.partial(resnext_bottom_forward, use_pallas=False))

    out = jax.block_until_ready(fwd(x, params))
    ref = jax.block_until_ready(fwd_ref(x, params))

    assert out.shape == (2, 256), out.shape
    assert bool(jnp.all(jnp.isfinite(out)))
    err = float(jnp.max(jnp.abs(out - ref)))
    assert bool(jnp.allclose(out, ref, atol=1e-2, rtol=1e-2)), err
    print("KERNEL_OK")
</pallas_src>

<mosaic_0001>
module attributes {stable_mosaic.version = 11 : i64} {
  func.func @_gemm_bias_act_kernel(%arg0: i32, %arg1: memref<64x147xbf16, #tpu.memory_space<vmem>>, %arg2: memref<147x128xbf16, #tpu.memory_space<vmem>>, %arg3: memref<1x128xf32, #tpu.memory_space<vmem>>, %arg4: memref<64x128xbf16, #tpu.memory_space<vmem>>) attributes {dimension_semantics = [#tpu.dimension_semantics<parallel>], iteration_bounds = array<i64: 2>, scalar_prefetch = 0 : i64, scratch_operands = 0 : i64, tpu.core_type = #tpu.core_type<tc>, window_params = [{transform_indices = @transform_0, window_bounds = array<i64: 64, 147>}, {pipeline_mode = #tpu.pipeline_mode<synchronous>, transform_indices = @transform_1, window_bounds = array<i64: 147, 128>}, {pipeline_mode = #tpu.pipeline_mode<synchronous>, transform_indices = @transform_2, window_bounds = array<i64: 1, 128>}, {transform_indices = @transform_3, window_bounds = array<i64: 64, 128>}]} {
    %c0 = arith.constant 0 : index
    %c0_0 = arith.constant 0 : index
    %0 = vector.load %arg1[%c0, %c0_0] : memref<64x147xbf16, #tpu.memory_space<vmem>>, vector<64x147xbf16>
    %c0_1 = arith.constant 0 : index
    %c0_2 = arith.constant 0 : index
    %1 = vector.load %arg2[%c0_1, %c0_2] : memref<147x128xbf16, #tpu.memory_space<vmem>>, vector<147x128xbf16>
    %cst = arith.constant dense<0.000000e+00> : vector<64x128xf32>
    %2 = tpu.matmul %0, %1, %cst {dimension_numbers = #tpu.dot_dimension_numbers<[1], [0], [0], [1], [0, 0, 1, 1], [], []>} : vector<64x147xbf16>, vector<147x128xbf16>, vector<64x128xf32> -> vector<64x128xf32>
    %c0_3 = arith.constant 0 : index
    %c0_4 = arith.constant 0 : index
    %3 = vector.load %arg3[%c0_3, %c0_4] : memref<1x128xf32, #tpu.memory_space<vmem>>, vector<1x128xf32>
    %4 = vector.broadcast %3 : vector<1x128xf32> to vector<64x128xf32>
    %5 = arith.addf %2, %4 : vector<64x128xf32>
    %cst_5 = arith.constant 0.000000e+00 : f32
    %6 = vector.broadcast %cst_5 : f32 to vector<64x128xf32>
    %7 = arith.maximumf %5, %6 : vector<64x128xf32>
    %8 = arith.truncf %7 : vector<64x128xf32> to vector<64x128xbf16>
    %c0_6 = arith.constant 0 : index
    %c0_7 = arith.constant 0 : index
    %9 = vector.load %arg4[%c0_6, %c0_7] : memref<64x128xbf16, #tpu.memory_space<vmem>>, vector<64x128xbf16>
    tpu.vector_store %arg4[%c0_6, %c0_7], %8 {strides = array<i32>} : memref<64x128xbf16, #tpu.memory_space<vmem>>, vector<64x128xbf16>,
    return
  }
  func.func @transform_0(%arg0: i32) -> (i32, i32) {
    %c0_i32 = arith.constant 0 : i32
    %c0_i32_0 = arith.constant 0 : i32
    return %arg0, %c0_i32 : i32, i32
  }
  func.func @transform_1(%arg0: i32) -> (i32, i32) {
    %c0_i32 = arith.constant 0 : i32
    %c0_i32_0 = arith.constant 0 : i32
    %c0_i32_1 = arith.constant 0 : i32
    return %c0_i32, %c0_i32_0 : i32, i32
  }
  func.func @transform_2(%arg0: i32) -> (i32, i32) {
    %c0_i32 = arith.constant 0 : i32
    %c0_i32_0 = arith.constant 0 : i32
    %c0_i32_1 = arith.constant 0 : i32
    return %c0_i32, %c0_i32_0 : i32, i32
  }
  func.func @transform_3(%arg0: i32) -> (i32, i32) {
    %c0_i32 = arith.constant 0 : i32
    %c0_i32_0 = arith.constant 0 : i32
    return %arg0, %c0_i32 : i32, i32
  }
}

module attributes {stable_mosaic.version = 11 : i64} {
  func.func @_maxpool_kernel(%arg0: i32, %arg1: memref<16x1152xbf16, #tpu.memory_space<vmem>>, %arg2: memref<16x128xbf16, #tpu.memory_space<vmem>>) attributes {dimension_semantics = [#tpu.dimension_semantics<parallel>], iteration_bounds = array<i64: 2>, scalar_prefetch = 0 : i64, scratch_operands = 0 : i64, tpu.core_type = #tpu.core_type<tc>, window_params = [{transform_indices = @transform_0, window_bounds = array<i64: 16, 1152>}, {transform_indices = @transform_1, window_bounds = array<i64: 16, 128>}]} {
    %c0 = arith.constant 0 : index
    %c0_0 = arith.constant 0 : index
    %0 = vector.load %arg1[%c0, %c0_0] : memref<16x1152xbf16, #tpu.memory_space<vmem>>, vector<16x128xbf16>
    %c0_1 = arith.constant 0 : index
    %c128 = arith.constant 128 : index
    %1 = vector.load %arg1[%c0_1, %c128] : memref<16x1152xbf16, #tpu.memory_space<vmem>>, vector<16x128xbf16>
    %2 = arith.maximumf %0, %1 : vector<16x128xbf16>
    %c0_2 = arith.constant 0 : index
    %c256 = arith.constant 256 : index
    %3 = vector.load %arg1[%c0_2, %c256] : memref<16x1152xbf16, #tpu.memory_space<vmem>>, vector<16x128xbf16>
    %4 = arith.maximumf %2, %3 : vector<16x128xbf16>
    %c0_3 = arith.constant 0 : index
    %c384 = arith.constant 384 : index
    %5 = vector.load %arg1[%c0_3, %c384] : memref<16x1152xbf16, #tpu.memory_space<vmem>>, vector<16x128xbf16>
    %6 = arith.maximumf %4, %5 : vector<16x128xbf16>
    %c0_4 = arith.constant 0 : index
    %c512 = arith.constant 512 : index
    %7 = vector.load %arg1[%c0_4, %c512] : memref<16x1152xbf16, #tpu.memory_space<vmem>>, vector<16x128xbf16>
    %8 = arith.maximumf %6, %7 : vector<16x128xbf16>
    %c0_5 = arith.constant 0 : index
    %c640 = arith.constant 640 : index
    %9 = vector.load %arg1[%c0_5, %c640] : memref<16x1152xbf16, #tpu.memory_space<vmem>>, vector<16x128xbf16>
    %10 = arith.maximumf %8, %9 : vector<16x128xbf16>
    %c0_6 = arith.constant 0 : index
    %c768 = arith.constant 768 : index
    %11 = vector.load %arg1[%c0_6, %c768] : memref<16x1152xbf16, #tpu.memory_space<vmem>>, vector<16x128xbf16>
    %12 = arith.maximumf %10, %11 : vector<16x128xbf16>
    %c0_7 = arith.constant 0 : index
    %c896 = arith.constant 896 : index
    %13 = vector.load %arg1[%c0_7, %c896] : memref<16x1152xbf16, #tpu.memory_space<vmem>>, vector<16x128xbf16>
    %14 = arith.maximumf %12, %13 : vector<16x128xbf16>
    %c0_8 = arith.constant 0 : index
    %c1024 = arith.constant 1024 : index
    %15 = vector.load %arg1[%c0_8, %c1024] : memref<16x1152xbf16, #tpu.memory_space<vmem>>, vector<16x128xbf16>
    %16 = arith.maximumf %14, %15 : vector<16x128xbf16>
    %c0_9 = arith.constant 0 : index
    %c0_10 = arith.constant 0 : index
    %17 = vector.load %arg2[%c0_9, %c0_10] : memref<16x128xbf16, #tpu.memory_space<vmem>>, vector<16x128xbf16>
    tpu.vector_store %arg2[%c0_9, %c0_10], %16 {strides = array<i32>} : memref<16x128xbf16, #tpu.memory_space<vmem>>, vector<16x128xbf16>,
    return
  }
  func.func @transform_0(%arg0: i32) -> (i32, i32) {
    %c0_i32 = arith.constant 0 : i32
    %c0_i32_0 = arith.constant 0 : i32
    return %arg0, %c0_i32 : i32, i32
  }
  func.func @transform_1(%arg0: i32) -> (i32, i32) {
    %c0_i32 = arith.constant 0 : i32
    %c0_i32_0 = arith.constant 0 : i32
    return %arg0, %c0_i32 : i32, i32
  }
}

module attributes {stable_mosaic.version = 11 : i64} {
  func.func @_gemm_bias_act_kernel(%arg0: i32, %arg1: memref<16x128xbf16, #tpu.memory_space<vmem>>, %arg2: memref<128x128xbf16, #tpu.memory_space<vmem>>, %arg3: memref<1x128xf32, #tpu.memory_space<vmem>>, %arg4: memref<16x128xbf16, #tpu.memory_space<vmem>>) attributes {dimension_semantics = [#tpu.dimension_semantics<parallel>], iteration_bounds = array<i64: 2>, scalar_prefetch = 0 : i64, scratch_operands = 0 : i64, tpu.core_type = #tpu.core_type<tc>, window_params = [{transform_indices = @transform_0, window_bounds = array<i64: 16, 128>}, {pipeline_mode = #tpu.pipeline_mode<synchronous>, transform_indices = @transform_1, window_bounds = array<i64: 128, 128>}, {pipeline_mode = #tpu.pipeline_mode<synchronous>, transform_indices = @transform_2, window_bounds = array<i64: 1, 128>}, {transform_indices = @transform_3, window_bounds = array<i64: 16, 128>}]} {
    %c0 = arith.constant 0 : index
    %c0_0 = arith.constant 0 : index
    %0 = vector.load %arg1[%c0, %c0_0] : memref<16x128xbf16, #tpu.memory_space<vmem>>, vector<16x128xbf16>
    %c0_1 = arith.constant 0 : index
    %c0_2 = arith.constant 0 : index
    %1 = vector.load %arg2[%c0_1, %c0_2] : memref<128x128xbf16, #tpu.memory_space<vmem>>, vector<128x128xbf16>
    %cst = arith.constant dense<0.000000e+00> : vector<16x128xf32>
    %2 = tpu.matmul %0, %1, %cst {dimension_numbers = #tpu.dot_dimension_numbers<[1], [0], [0], [1], [0, 0, 1, 1], [], []>} : vector<16x128xbf16>, vector<128x128xbf16>, vector<16x128xf32> -> vector<16x128xf32>
    %c0_3 = arith.constant 0 : index
    %c0_4 = arith.constant 0 : index
    %3 = vector.load %arg3[%c0_3, %c0_4] : memref<1x128xf32, #tpu.memory_space<vmem>>, vector<1x128xf32>
    %4 = vector.broadcast %3 : vector<1x128xf32> to vector<16x128xf32>
    %5 = arith.addf %2, %4 : vector<16x128xf32>
    %cst_5 = arith.constant 0.000000e+00 : f32
    %6 = vector.broadcast %cst_5 : f32 to vector<16x128xf32>
    %7 = arith.maximumf %5, %6 : vector<16x128xf32>
    %8 = arith.truncf %7 : vector<16x128xf32> to vector<16x128xbf16>
    %c0_6 = arith.constant 0 : index
    %c0_7 = arith.constant 0 : index
    %9 = vector.load %arg4[%c0_6, %c0_7] : memref<16x128xbf16, #tpu.memory_space<vmem>>, vector<16x128xbf16>
    tpu.vector_store %arg4[%c0_6, %c0_7], %8 {strides = array<i32>} : memref<16x128xbf16, #tpu.memory_space<vmem>>, vector<16x128xbf16>,
    return
  }
  func.func @transform_0(%arg0: i32) -> (i32, i32) {
    %c0_i32 = arith.constant 0 : i32
    %c0_i32_0 = arith.constant 0 : i32
    return %arg0, %c0_i32 : i32, i32
  }
  func.func @transform_1(%arg0: i32) -> (i32, i32) {
    %c0_i32 = arith.constant 0 : i32
    %c0_i32_0 = arith.constant 0 : i32
    %c0_i32_1 = arith.constant 0 : i32
    return %c0_i32, %c0_i32_0 : i32, i32
  }
  func.func @transform_2(%arg0: i32) -> (i32, i32) {
    %c0_i32 = arith.constant 0 : i32
    %c0_i32_0 = arith.constant 0 : i32
    %c0_i32_1 = arith.constant 0 : i32
    return %c0_i32, %c0_i32_0 : i32, i32
  }
  func.func @transform_3(%arg0: i32) -> (i32, i32) {
    %c0_i32 = arith.constant 0 : i32
    %c0_i32_0 = arith.constant 0 : i32
    return %arg0, %c0_i32 : i32, i32
  }
}

module attributes {stable_mosaic.version = 11 : i64} {
  func.func @_conv3x3_kernel(%arg0: i32, %arg1: memref<1x42x128xbf16, #tpu.memory_space<vmem>>, %arg2: memref<9x128x128xbf16, #tpu.memory_space<vmem>>, %arg3: memref<1x128xf32, #tpu.memory_space<vmem>>, %arg4: memref<1x24x128xbf16, #tpu.memory_space<vmem>>) attributes {dimension_semantics = [#tpu.dimension_semantics<parallel>], iteration_bounds = array<i64: 2>, scalar_prefetch = 0 : i64, scratch_operands = 0 : i64, tpu.core_type = #tpu.core_type<tc>, window_params = [{transform_indices = @transform_0, window_bounds = array<i64: 1, 42, 128>}, {pipeline_mode = #tpu.pipeline_mode<synchronous>, transform_indices = @transform_1, window_bounds = array<i64: 9, 128, 128>}, {pipeline_mode = #tpu.pipeline_mode<synchronous>, transform_indices = @transform_2, window_bounds = array<i64: 1, 128>}, {transform_indices = @transform_3, window_bounds = array<i64: 1, 24, 128>}]} {
    %cst = arith.constant 0.000000e+00 : f32
    %0 = vector.broadcast %cst : f32 to vector<24x128xf32>
    %c0 = arith.constant 0 : index
    %c0_0 = arith.constant 0 : index
    %c0_1 = arith.constant 0 : index
    %1 = vector.load %arg1[%c0, %c0_0, %c0_1] : memref<1x42x128xbf16, #tpu.memory_space<vmem>>, vector<1x24x128xbf16>
    %2 = vector.shape_cast %1 : vector<1x24x128xbf16> to vector<24x128xbf16>
    %c0_2 = arith.constant 0 : index
    %c0_3 = arith.constant 0 : index
    %c0_4 = arith.constant 0 : index
    %3 = vector.load %arg2[%c0_2, %c0_3, %c0_4] : memref<9x128x128xbf16, #tpu.memory_space<vmem>>, vector<1x128x128xbf16>
    %4 = vector.shape_cast %3 : vector<1x128x128xbf16> to vector<128x128xbf16>
    %cst_5 = arith.constant dense<0.000000e+00> : vector<24x128xf32>
    %5 = tpu.matmul %2, %4, %cst_5 {dimension_numbers = #tpu.dot_dimension_numbers<[1], [0], [0], [1], [0, 0, 1, 1], [], []>} : vector<24x128xbf16>, vector<128x128xbf16>, vector<24x128xf32> -> vector<24x128xf32>
    %6 = arith.addf %0, %5 : vector<24x128xf32>
    %c0_6 = arith.constant 0 : index
    %c1 = arith.constant 1 : index
    %c0_7 = arith.constant 0 : index
    %7 = vector.load %arg1[%c0_6, %c1, %c0_7] : memref<1x42x128xbf16, #tpu.memory_space<vmem>>, vector<1x24x128xbf16>
    %8 = vector.shape_cast %7 : vector<1x24x128xbf16> to vector<24x128xbf16>
    %c1_8 = arith.constant 1 : index
    %c0_9 = arith.constant 0 : index
    %c0_10 = arith.constant 0 : index
    %9 = vector.load %arg2[%c1_8, %c0_9, %c0_10] : memref<9x128x128xbf16, #tpu.memory_space<vmem>>, vector<1x128x128xbf16>
    %10 = vector.shape_cast %9 : vector<1x128x128xbf16> to vector<128x128xbf16>
    %cst_11 = arith.constant dense<0.000000e+00> : vector<24x128xf32>
    %11 = tpu.matmul %8, %10, %cst_11 {dimension_numbers = #tpu.dot_dimension_numbers<[1], [0], [0], [1], [0, 0, 1, 1], [], []>} : vector<24x128xbf16>, vector<128x128xbf16>, vector<24x128xf32> -> vector<24x128xf32>
    %12 = arith.addf %6, %11 : vector<24x128xf32>
    %c0_12 = arith.constant 0 : index
    %c2 = arith.constant 2 : index
    %c0_13 = arith.constant 0 : index
    %13 = vector.load %arg1[%c0_12, %c2, %c0_13] : memref<1x42x128xbf16, #tpu.memory_space<vmem>>, vector<1x24x128xbf16>
    %14 = vector.shape_cast %13 : vector<1x24x128xbf16> to vector<24x128xbf16>
    %c2_14 = arith.constant 2 : index
    %c0_15 = arith.constant 0 : index
    %c0_16 = arith.constant 0 : index
    %15 = vector.load %arg2[%c2_14, %c0_15, %c0_16] : memref<9x128x128xbf16, #tpu.memory_space<vmem>>, vector<1x128x128xbf16>
    %16 = vector.shape_cast %15 : vector<1x128x128xbf16> to vector<128x128xbf16>
    %cst_17 = arith.constant dense<0.000000e+00> : vector<24x128xf32>
    %17 = tpu.matmul %14, %16, %cst_17 {dimension_numbers = #tpu.dot_dimension_numbers<[1], [0], [0], [1], [0, 0, 1, 1], [], []>} : vector<24x128xbf16>, vector<128x128xbf16>, vector<24x128xf32> -> vector<24x128xf32>
    %18 = arith.addf %12, %17 : vector<24x128xf32>
    %c0_18 = arith.constant 0 : index
    %c6 = arith.constant 6 : index
    %c0_19 = arith.constant 0 : index
    %19 = vector.load %arg1[%c0_18, %c6, %c0_19] : memref<1x42x128xbf16, #tpu.memory_space<vmem>>, vector<1x24x128xbf16>
    %20 = vector.shape_cast %19 : vector<1x24x128xbf16> to vector<24x128xbf16>
    %c3 = arith.constant 3 : index
    %c0_20 = arith.constant 0 : index
    %c0_21 = arith.constant 0 : index
    %21 = vector.load %arg2[%c3, %c0_20, %c0_21] : memref<9x128x128xbf16, #tpu.memory_space<vmem>>, vector<1x128x128xbf16>
    %22 = vector.shape_cast %21 : vector<1x128x128xbf16> to vector<128x128xbf16>
    %cst_22 = arith.constant dense<0.000000e+00> : vector<24x128xf32>
    %23 = tpu.matmul %20, %22, %cst_22 {dimension_numbers = #tpu.dot_dimension_numbers<[1], [0], [0], [1], [0, 0, 1, 1], [], []>} : vector<24x128xbf16>, vector<128x128xbf16>, vector<24x128xf32> -> vector<24x128xf32>
    %24 = arith.addf %18, %23 : vector<24x128xf32>
    %c0_23 = arith.constant 0 : index
    %c7 = arith.constant 7 : index
    %c0_24 = arith.constant 0 : index
    %25 = vector.load %arg1[%c0_23, %c7, %c0_24] : memref<1x42x128xbf16, #tpu.memory_space<vmem>>, vector<1x24x128xbf16>
    %26 = vector.shape_cast %25 : vector<1x24x128xbf16> to vector<24x128xbf16>
    %c4 = arith.constant 4 : index
    %c0_25 = arith.constant 0 : index
    %c0_26 = arith.constant 0 : index
    %27 = vector.load %arg2[%c4, %c0_25, %c0_26] : memref<9x128x128xbf16, #tpu.memory_space<vmem>>, vector<1x128x128xbf16>
    %28 = vector.shape_cast %27 : vector<1x128x128xbf16> to vector<128x128xbf16>
    %cst_27 = arith.constant dense<0.000000e+00> : vector<24x128xf32>
    %29 = tpu.matmul %26, %28, %cst_27 {dimension_numbers = #tpu.dot_dimension_numbers<[1], [0], [0], [1], [0, 0, 1, 1], [], []>} : vector<24x128xbf16>, vector<128x128xbf16>, vector<24x128xf32> -> vector<24x128xf32>
    %30 = arith.addf %24, %29 : vector<24x128xf32>
    %c0_28 = arith.constant 0 : index
    %c8 = arith.constant 8 : index
    %c0_29 = arith.constant 0 : index
    %31 = vector.load %arg1[%c0_28, %c8, %c0_29] : memref<1x42x128xbf16, #tpu.memory_space<vmem>>, vector<1x24x128xbf16>
    %32 = vector.shape_cast %31 : vector<1x24x128xbf16> to vector<24x128xbf16>
    %c5 = arith.constant 5 : index
    %c0_30 = arith.constant 0 : index
    %c0_31 = arith.constant 0 : index
    %33 = vector.load %arg2[%c5, %c0_30, %c0_31] : memref<9x128x128xbf16, #tpu.memory_space<vmem>>, vector<1x128x128xbf16>
    %34 = vector.shape_cast %33 : vector<1x128x128xbf16> to vector<128x128xbf16>
    %cst_32 = arith.constant dense<0.000000e+00> : vector<24x128xf32>
    %35 = tpu.matmul %32, %34, %cst_32 {dimension_numbers = #tpu.dot_dimension_numbers<[1], [0], [0], [1], [0, 0, 1, 1], [], []>} : vector<24x128xbf16>, vector<128x128xbf16>, vector<24x128xf32> -> vector<24x128xf32>
    %36 = arith.addf %30, %35 : vector<24x128xf32>
    %c0_33 = arith.constant 0 : index
    %c12 = arith.constant 12 : index
    %c0_34 = arith.constant 0 : index
    %37 = vector.load %arg1[%c0_33, %c12, %c0_34] : memref<1x42x128xbf16, #tpu.memory_space<vmem>>, vector<1x24x128xbf16>
    %38 = vector.shape_cast %37 : vector<1x24x128xbf16> to vector<24x128xbf16>
    %c6_35 = arith.constant 6 : index
    %c0_36 = arith.constant 0 : index
    %c0_37 = arith.constant 0 : index
    %39 = vector.load %arg2[%c6_35, %c0_36, %c0_37] : memref<9x128x128xbf16, #tpu.memory_space<vmem>>, vector<1x128x128xbf16>
    %40 = vector.shape_cast %39 : vector<1x128x128xbf16> to vector<128x128xbf16>
    %cst_38 = arith.constant dense<0.000000e+00> : vector<24x128xf32>
    %41 = tpu.matmul %38, %40, %cst_38 {dimension_numbers = #tpu.dot_dimension_numbers<[1], [0], [0], [1], [0, 0, 1, 1], [], []>} : vector<24x128xbf16>, vector<128x128xbf16>, vector<24x128xf32> -> vector<24x128xf32>
    %42 = arith.addf %36, %41 : vector<24x128xf32>
    %c0_39 = arith.constant 0 : index
    %c13 = arith.constant 13 : index
    %c0_40 = arith.constant 0 : index
    %43 = vector.load %arg1[%c0_39, %c13, %c0_40] : memref<1x42x128xbf16, #tpu.memory_space<vmem>>, vector<1x24x128xbf16>
    %44 = vector.shape_cast %43 : vector<1x24x128xbf16> to vector<24x128xbf16>
    %c7_41 = arith.constant 7 : index
    %c0_42 = arith.constant 0 : index
    %c0_43 = arith.constant 0 : index
    %45 = vector.load %arg2[%c7_41, %c0_42, %c0_43] : memref<9x128x128xbf16, #tpu.memory_space<vmem>>, vector<1x128x128xbf16>
    %46 = vector.shape_cast %45 : vector<1x128x128xbf16> to vector<128x128xbf16>
    %cst_44 = arith.constant dense<0.000000e+00> : vector<24x128xf32>
    %47 = tpu.matmul %44, %46, %cst_44 {dimension_numbers = #tpu.dot_dimension_numbers<[1], [0], [0], [1], [0, 0, 1, 1], [], []>} : vector<24x128xbf16>, vector<128x128xbf16>, vector<24x128xf32> -> vector<24x128xf32>
    %48 = arith.addf %42, %47 : vector<24x128xf32>
    %c0_45 = arith.constant 0 : index
    %c14 = arith.constant 14 : index
    %c0_46 = arith.constant 0 : index
    %49 = vector.load %arg1[%c0_45, %c14, %c0_46] : memref<1x42x128xbf16, #tpu.memory_space<vmem>>, vector<1x24x128xbf16>
    %50 = vector.shape_cast %49 : vector<1x24x128xbf16> to vector<24x128xbf16>
    %c8_47 = arith.constant 8 : index
    %c0_48 = arith.constant 0 : index
    %c0_49 = arith.constant 0 : index
    %51 = vector.load %arg2[%c8_47, %c0_48, %c0_49] : memref<9x128x128xbf16, #tpu.memory_space<vmem>>, vector<1x128x128xbf16>
    %52 = vector.shape_cast %51 : vector<1x128x128xbf16> to vector<128x128xbf16>
    %cst_50 = arith.constant dense<0.000000e+00> : vector<24x128xf32>
    %53 = tpu.matmul %50, %52, %cst_50 {dimension_numbers = #tpu.dot_dimension_numbers<[1], [0], [0], [1], [0, 0, 1, 1], [], []>} : vector<24x128xbf16>, vector<128x128xbf16>, vector<24x128xf32> -> vector<24x128xf32>
    %54 = arith.addf %48, %53 : vector<24x128xf32>
    %c0_51 = arith.constant 0 : index
    %c0_52 = arith.constant 0 : index
    %55 = vector.load %arg3[%c0_51, %c0_52] : memref<1x128xf32, #tpu.memory_space<vmem>>, vector<1x128xf32>
    %56 = vector.broadcast %55 : vector<1x128xf32> to vector<24x128xf32>
    %57 = arith.addf %54, %56 : vector<24x128xf32>
    %cst_53 = arith.constant 0.000000e+00 : f32
    %58 = vector.broadcast %cst_53 : f32 to vector<24x128xf32>
    %59 = arith.maximumf %57, %58 : vector<24x128xf32>
    %60 = arith.truncf %59 : vector<24x128xf32> to vector<24x128xbf16>
    %c0_54 = arith.constant 0 : index
    %c0_55 = arith.constant 0 : index
    %c0_56 = arith.constant 0 : index
    %61 = vector.load %arg4[%c0_54, %c0_55, %c0_56] : memref<1x24x128xbf16, #tpu.memory_space<vmem>>, vector<1x24x128xbf16>
    %62 = vector.shape_cast %61 : vector<1x24x128xbf16> to vector<24x128xbf16>
    %63 = vector.shape_cast %60 : vector<24x128xbf16> to vector<1x24x128xbf16>
    tpu.vector_store %arg4[%c0_54, %c0_55, %c0_56], %63 {strides = array<i32>} : memref<1x24x128xbf16, #tpu.memory_space<vmem>>, vector<1x24x128xbf16>,
    return
  }
  func.func @transform_0(%arg0: i32) -> (i32, i32, i32) {
    %c0_i32 = arith.constant 0 : i32
    %c0_i32_0 = arith.constant 0 : i32
    %c0_i32_1 = arith.constant 0 : i32
    return %arg0, %c0_i32, %c0_i32_0 : i32, i32, i32
  }
  func.func @transform_1(%arg0: i32) -> (i32, i32, i32) {
    %c0_i32 = arith.constant 0 : i32
    %c0_i32_0 = arith.constant 0 : i32
    %c0_i32_1 = arith.constant 0 : i32
    %c0_i32_2 = arith.constant 0 : i32
    return %c0_i32, %c0_i32_0, %c0_i32_1 : i32, i32, i32
  }
  func.func @transform_2(%arg0: i32) -> (i32, i32) {
    %c0_i32 = arith.constant 0 : i32
    %c0_i32_0 = arith.constant 0 : i32
    %c0_i32_1 = arith.constant 0 : i32
    return %c0_i32, %c0_i32_0 : i32, i32
  }
  func.func @transform_3(%arg0: i32) -> (i32, i32, i32) {
    %c0_i32 = arith.constant 0 : i32
    %c0_i32_0 = arith.constant 0 : i32
    %c0_i32_1 = arith.constant 0 : i32
    return %arg0, %c0_i32, %c0_i32_0 : i32, i32, i32
  }
}

module attributes {stable_mosaic.version = 11 : i64} {
  func.func @_tail_pool_kernel(%arg0: i32, %arg1: memref<1x16x128xbf16, #tpu.memory_space<vmem>>, %arg2: memref<1x16x128xbf16, #tpu.memory_space<vmem>>, %arg3: memref<128x256xbf16, #tpu.memory_space<vmem>>, %arg4: memref<128x256xbf16, #tpu.memory_space<vmem>>, %arg5: memref<1x256xf32, #tpu.memory_space<vmem>>, %arg6: memref<1x1x256xf32, #tpu.memory_space<vmem>>) attributes {dimension_semantics = [#tpu.dimension_semantics<parallel>], iteration_bounds = array<i64: 2>, scalar_prefetch = 0 : i64, scratch_operands = 0 : i64, tpu.core_type = #tpu.core_type<tc>, window_params = [{transform_indices = @transform_0, window_bounds = array<i64: 1, 16, 128>}, {transform_indices = @transform_1, window_bounds = array<i64: 1, 16, 128>}, {pipeline_mode = #tpu.pipeline_mode<synchronous>, transform_indices = @transform_2, window_bounds = array<i64: 128, 256>}, {pipeline_mode = #tpu.pipeline_mode<synchronous>, transform_indices = @transform_3, window_bounds = array<i64: 128, 256>}, {pipeline_mode = #tpu.pipeline_mode<synchronous>, transform_indices = @transform_4, window_bounds = array<i64: 1, 256>}, {transform_indices = @transform_5, window_bounds = array<i64: 1, 1, 256>}]} {
    %c0 = arith.constant 0 : index
    %c0_0 = arith.constant 0 : index
    %c0_1 = arith.constant 0 : index
    %0 = vector.load %arg1[%c0, %c0_0, %c0_1] : memref<1x16x128xbf16, #tpu.memory_space<vmem>>, vector<1x16x128xbf16>
    %1 = vector.shape_cast %0 : vector<1x16x128xbf16> to vector<16x128xbf16>
    %c0_2 = arith.constant 0 : index
    %c0_3 = arith.constant 0 : index
    %2 = vector.load %arg3[%c0_2, %c0_3] : memref<128x256xbf16, #tpu.memory_space<vmem>>, vector<128x256xbf16>
    %cst = arith.constant dense<0.000000e+00> : vector<16x256xf32>
    %3 = tpu.matmul %1, %2, %cst {dimension_numbers = #tpu.dot_dimension_numbers<[1], [0], [0], [1], [0, 0, 1, 1], [], []>} : vector<16x128xbf16>, vector<128x256xbf16>, vector<16x256xf32> -> vector<16x256xf32>
    %c0_4 = arith.constant 0 : index
    %c0_5 = arith.constant 0 : index
    %c0_6 = arith.constant 0 : index
    %4 = vector.load %arg2[%c0_4, %c0_5, %c0_6] : memref<1x16x128xbf16, #tpu.memory_space<vmem>>, vector<1x16x128xbf16>
    %5 = vector.shape_cast %4 : vector<1x16x128xbf16> to vector<16x128xbf16>
    %c0_7 = arith.constant 0 : index
    %c0_8 = arith.constant 0 : index
    %6 = vector.load %arg4[%c0_7, %c0_8] : memref<128x256xbf16, #tpu.memory_space<vmem>>, vector<128x256xbf16>
    %cst_9 = arith.constant dense<0.000000e+00> : vector<16x256xf32>
    %7 = tpu.matmul %5, %6, %cst_9 {dimension_numbers = #tpu.dot_dimension_numbers<[1], [0], [0], [1], [0, 0, 1, 1], [], []>} : vector<16x128xbf16>, vector<128x256xbf16>, vector<16x256xf32> -> vector<16x256xf32>
    %8 = arith.addf %3, %7 : vector<16x256xf32>
    %c0_10 = arith.constant 0 : index
    %c0_11 = arith.constant 0 : index
    %9 = vector.load %arg5[%c0_10, %c0_11] : memref<1x256xf32, #tpu.memory_space<vmem>>, vector<1x256xf32>
    %10 = vector.broadcast %9 : vector<1x256xf32> to vector<16x256xf32>
    %11 = arith.addf %8, %10 : vector<16x256xf32>
    %cst_12 = arith.constant 0.000000e+00 : f32
    %12 = vector.broadcast %cst_12 : f32 to vector<16x256xf32>
    %13 = arith.maximumf %11, %12 : vector<16x256xf32>
    %cst_13 = arith.constant dense<0.000000e+00> : vector<256xf32>
    %14 = vector.multi_reduction <add>, %13, %cst_13 [0] : vector<16x256xf32> to vector<256xf32>
    %15 = vector.shape_cast %14 : vector<256xf32> to vector<1x256xf32>
    %cst_14 = arith.constant 6.250000e-02 : f32
    %16 = vector.broadcast %cst_14 : f32 to vector<1x256xf32>
    %17 = arith.mulf %15, %16 : vector<1x256xf32>
    %c0_15 = arith.constant 0 : index
    %c0_16 = arith.constant 0 : index
    %c0_17 = arith.constant 0 : index
    %18 = vector.load %arg6[%c0_15, %c0_16, %c0_17] : memref<1x1x256xf32, #tpu.memory_space<vmem>>, vector<1x1x256xf32>
    %19 = vector.shape_cast %18 : vector<1x1x256xf32> to vector<1x256xf32>
    %20 = vector.shape_cast %17 : vector<1x256xf32> to vector<1x1x256xf32>
    tpu.vector_store %arg6[%c0_15, %c0_16, %c0_17], %20 {strides = array<i32>} : memref<1x1x256xf32, #tpu.memory_space<vmem>>, vector<1x1x256xf32>,
    return
  }
  func.func @transform_0(%arg0: i32) -> (i32, i32, i32) {
    %c0_i32 = arith.constant 0 : i32
    %c0_i32_0 = arith.constant 0 : i32
    %c0_i32_1 = arith.constant 0 : i32
    return %arg0, %c0_i32, %c0_i32_0 : i32, i32, i32
  }
  func.func @transform_1(%arg0: i32) -> (i32, i32, i32) {
    %c0_i32 = arith.constant 0 : i32
    %c0_i32_0 = arith.constant 0 : i32
    %c0_i32_1 = arith.constant 0 : i32
    return %arg0, %c0_i32, %c0_i32_0 : i32, i32, i32
  }
  func.func @transform_2(%arg0: i32) -> (i32, i32) {
    %c0_i32 = arith.constant 0 : i32
    %c0_i32_0 = arith.constant 0 : i32
    %c0_i32_1 = arith.constant 0 : i32
    return %c0_i32, %c0_i32_0 : i32, i32
  }
  func.func @transform_3(%arg0: i32) -> (i32, i32) {
    %c0_i32 = arith.constant 0 : i32
    %c0_i32_0 = arith.constant 0 : i32
    %c0_i32_1 = arith.constant 0 : i32
    return %c0_i32, %c0_i32_0 : i32, i32
  }
  func.func @transform_4(%arg0: i32) -> (i32, i32) {
    %c0_i32 = arith.constant 0 : i32
    %c0_i32_0 = arith.constant 0 : i32
    %c0_i32_1 = arith.constant 0 : i32
    return %c0_i32, %c0_i32_0 : i32, i32
  }
  func.func @transform_5(%arg0: i32) -> (i32, i32, i32) {
    %c0_i32 = arith.constant 0 : i32
    %c0_i32_0 = arith.constant 0 : i32
    %c0_i32_1 = arith.constant 0 : i32
    return %arg0, %c0_i32, %c0_i32_0 : i32, i32, i32
  }
}

</mosaic_0001>

<bundles_post_ra>
// kernel: resnext_bottom_forward.5
= control target key start
LH: loop header
LB: loop body
LE: loop exit
PB: predicated region body
PF: predicated region fallthrough
CT: control target
= control target key end

     0   :  { %s634_s12 = smov 0   ;;  %s716_s0 = inlined_call_operand.vmem [shape: bf16[128,147], index: 0, kind: input, shape index: {}]   ;;  %s717_s1 = inlined_call_operand.vmem [shape: bf16[147,128], index: 1, kind: input, shape index: {}]   ;;  %s718_s2 = inlined_call_operand.vmem [shape: f32[1,128], index: 2, kind: input, shape index: {}]   ;;  %s719_s3 = inlined_call_operand.vmem [shape: bf16[128,128], index: 3, kind: output, shape index: {}]  }
   0x1 LB: > { %s460_s13 = sadd.s32 4294967295, %s611_s12   ;;  %p464_p0 = scmp.ge.s32.totalorder %s611_s12, 1  ;;  %s611_s12 = sphi %s634_s12, %s13_s12  }
   0x2   : > { %p139_p1 = scmp.lt.s32.totalorder %s611_s12, 3 }
   0x4   : > { %p140_p2 = pnand %p464_p0, %p139_p1 }
   0x5   : > { %s465_s18 = sshll.u32 (!%p140_p2), %s460_s13, 3 }
   0x6   : > { %143 = sbr.rel (%p140_p2) target bundleno = 208 (0xd0), region = 32  ;;  %p165_p3 = scmp.lt.s32.totalorder (!%p140_p2), %s465_s18, 15 }
   0xb   : > { %v560_v0 = vld [vmem:[%s717_s1 + $0x38] sm:$0xff]  ;;  %v204_v1 = vld [vmem:[%s717_s1 + $0x48] sm:$0x3]  ;;  %vm315_vm0 = vcmask 1040384   ;;  %vm316_vm1 = vcmask 1041408   ;;  %v559_v3 = vld [vmem:[%s717_s1 + $0x30] sm:$0xff] }
   0xc   : > { %v282_v2 = vunpack.c.l.b16 %v204_v1  ;;  %322 = vmatpush.bf16.msra.mxu0 %v560_v0  ;;  %585 = vmatpush.bf16.msra.mxu2 %v560_v0  ;;  %v613_v4 = vmov 65535   ;;  %s721_s18 = smov (!%p165_p3, %s465_s18), 15  ;;  %v558_v9 = vld [vmem:[%s717_s1 + $0x28] sm:$0xff]  ;;  %v561_v10 = vld [vmem:[%s717_s1 + $0x40] sm:$0xff]  ;;  %vm302_vm2 = vcmask 154624   ;;  %v556_v18 = vld [vmem:[%s717_s1 + $0x18] sm:$0xff] }
   0xd   : > { %v317_v5 = vsel %vm315_vm0, 4294967295, %v613_v4  ;;  %s544_s23 = sshll.u32 %s721_s18, 3  ;;  %v557_v14 = vld [vmem:[%s717_s1 + $0x20] sm:$0xff]  ;;  %v555_v19 = vld [vmem:[%s717_s1 + $0x10] sm:$0xff]  ;;  %v554_v20 = vld [vmem:[%s717_s1 + $0x8] sm:$0xff]  ;;  %s469_s15 = sshll.u32 %s721_s18, 2 }
   0xe   : > { %v292_v6 = vpack.c.b16 %v282_v2, %v282_v2  ;;  %v318_v7 = vsel %vm316_vm1, %v317_v5, 0  ;;  %s663_s28 = scalar_lea.vmem %s716_s0, %s544_s23  ;;  %v553_v24 = vld [vmem:[%s717_s1] sm:$0xff]  ;;  %s707_s19 = scalar_lea.vmem %s719_s3, %s469_s15 }
   0xf   : > { %v547_v11 = vld [vmem:[%s663_s28 + $0x14] sm:$0xf]  ;;  %v482_v12 = vld [vmem:[%s663_s28 + $0x18] sm:$0xf0]  ;;  %v545_v15 = vld [vmem:[%s663_s28 + $0x4] sm:$0xf] }
  0x10   : > { %v320_v8 = vand.u32 %v318_v7, %v292_v6  ;;  %323 = vmatpush.bf16.msra.mxu0 %v559_v3  ;;  %586 = vmatpush.bf16.msra.mxu2 %v559_v3  ;;  %v485_v13 = vor.u32 %v547_v11, %v482_v12  ;;  %v474_v16 = vld [vmem:[%s663_s28 + $0x8] sm:$0xf0]  ;;  %v549_v21 = vld [vmem:[%s663_s28 + $0x24] sm:$0xf]  ;;  %v472_v25 = vld [vmem:[%s663_s28] sm:$0xf] }
  0x11   : > { %v477_v17 = vor.u32 %v545_v15, %v474_v16  ;;  %v490_v22 = vld [vmem:[%s663_s28 + $0x28] sm:$0xf0]  ;;  %v546_v26 = vld [vmem:[%s663_s28 + $0x4] sm:$0xf0]  ;;  %v488_v27 = vld [vmem:[%s663_s28 + $0x20] sm:$0xf] }
  0x12   : > { %593 = vmatpush.bf16.msra.mxu3 %v320_v8  ;;  %357 = vmatpush.bf16.msra.mxu1 %v320_v8  ;;  %v493_v23 = vor.u32 %v549_v21, %v490_v22  ;;  %v550_v28 = vld [vmem:[%s663_s28 + $0x24] sm:$0xf0]  ;;  %v473_v29 = vor.u32 %v546_v26, %v472_v25  ;;  %v551_v31 = vld [vmem:[%s663_s28 + $0x34] sm:$0xf]  ;;  %v498_v32 = vld [vmem:[%s663_s28 + $0x38] sm:$0xf0] }
  0x13   : > { %v489_v30 = vor.u32 %v550_v28, %v488_v27  ;;  %v501_v33 = vor.u32 %v551_v31, %v498_v32  ;;  %v480_v34 = vld [vmem:[%s663_s28 + $0x10] sm:$0xf]  ;;  %v548_v35 = vld [vmem:[%s663_s28 + $0x14] sm:$0xf0]  ;;  %v604_v44 = vld [vmem:[%s718_s2] ss:$0 sm:$0xff] }
  0x14   : > { %324 = vmatpush.bf16.msra.mxu0 %v558_v9  ;;  %587 = vmatpush.bf16.msra.mxu2 %v558_v9  ;;  %v496_v36 = vld [vmem:[%s663_s28 + $0x30] sm:$0xf]  ;;  %v552_v37 = vld [vmem:[%s663_s28 + $0x34] sm:$0xf0]  ;;  %v481_v38 = vor.u32 %v548_v35, %v480_v34 }
  0x15   : > { %v497_v39 = vor.u32 %v552_v37, %v496_v36 }
  0x16   : > { %594 = vmatpush.bf16.msra.mxu3 %v561_v10  ;;  %358 = vmatpush.bf16.msra.mxu1 %v561_v10 }
  0x18   : > { %325 = vmatpush.bf16.msra.mxu0 %v557_v14  ;;  %588 = vmatpush.bf16.msra.mxu2 %v557_v14 }
  0x19   : > { %539 = vmatmul.msk.bf16.vlgmr.msra.gmra.mxu3 %vm302_vm2, %v485_v13  ;;  %538 = vmatmul.msk.bf16.vlgmr.msra.gmra.mxu1 %vm302_vm2, %v477_v17 }
  0x1c   : > { %326 = vmatpush.bf16.msra.mxu0 %v556_v18  ;;  %589 = vmatpush.bf16.msra.mxu2 %v556_v18 }
  0x20   : > { %327 = vmatpush.bf16.msra.mxu0 %v555_v19  ;;  %590 = vmatpush.bf16.msra.mxu2 %v555_v19 }
  0x24   : > { %328 = vmatpush.bf16.msra.mxu0 %v554_v20  ;;  %591 = vmatpush.bf16.msra.mxu2 %v554_v20 }
  0x28   : > { %329 = vmatpush.bf16.msra.mxu0 %v553_v24  ;;  %592 = vmatpush.bf16.msra.mxu2 %v553_v24 }
  0x29   : > { %540 = vmatmul.msk.bf16.gmra.mxu3 %vm302_vm2, %v493_v23 }
  0x2b   : > { %330 = vmatmul.bf16.vlgmr.msra.gmra.mxu0 %v473_v29  ;;  %340 = vmatmul.bf16.vlgmr.msra.gmra.mxu2 %v489_v30 }
  0x39   : > { %541 = vmatmul.msk.bf16.gmra.mxu3 %vm302_vm2, %v501_v33 }
  0x3b   : > { %335 = vmatmul.bf16.gmra.mxu0 %v481_v38  ;;  %345 = vmatmul.bf16.gmra.mxu2 %v497_v39 }
  0x96   : > { %v360_v42 = vpop.f32.mrf.mxu1 }
  0x9c   : > { %v365_v40 = vpop.f32.mrf.mxu3 }
  0x9e   : > { %v362_v49 = vpop.f32.mrf.mxu1 }
  0xa4   : > { %v367_v41 = vpop.f32.mrf.mxu3 }
  0xa8   : > { %v331_v43 = vpop.f32.mrf.mxu0 }
  0xa9   : > { %v332_v46 = vadd.f32 %v604_v44, %v331_v43 }
  0xab   : > { %v361_v50 = vadd.f32 %v360_v42, %v332_v46 }
  0xac   : > { %v370_v45 = vpop.f32.mrf.mxu3 }
  0xad   : > { %v380_v54 = vmax.f32 %v361_v50, 0.0 }
  0xae   : > { %v341_v47 = vpop.f32.mrf.mxu2 }
  0xaf   : > { %v342_v53 = vadd.f32 %v604_v44, %v341_v47 }
  0xb0   : > { %v333_v48 = vpop.f32.mrf.mxu0 }
  0xb1   : > { %v334_v51 = vadd.f32 %v604_v44, %v333_v48  ;;  %v371_v59 = vadd.f32 %v370_v45, %v342_v53 }
  0xb3   : > { %v363_v52 = vadd.f32 %v362_v49, %v334_v51  ;;  %v384_v63 = vmax.f32 %v371_v59, 0.0 }
  0xb4   : > { %v372_v56 = vpop.f32.mrf.mxu3 }
  0xb5   : > { %v381_v55 = vmax.f32 %v363_v52, 0.0 }
  0xb6   : > { %v343_v58 = vpop.f32.mrf.mxu2 }
  0xb7   : > { %v565_v57 = vpack.c.bf16 %v381_v55, %v380_v54  ;;  %v344_v60 = vadd.f32 %v604_v44, %v343_v58 }
  0xb8   : > { %v336_v61 = vpop.f32.mrf.mxu0 }
  0xb9   : > { %566 = vst [vmem:[%s707_s19] sm:$0xff] %v565_v57   ;;  %v373_v62 = vadd.f32 %v372_v56, %v344_v60  ;;  %v337_v1 = vadd.f32 %v604_v44, %v336_v61 }
  0xbb   : > { %v385_v0 = vmax.f32 %v373_v62, 0.0  ;;  %v366_v6 = vadd.f32 %v365_v40, %v337_v1 }
  0xbc   : > { %v375_v3 = vpop.f32.mrf.mxu3 }
  0xbd   : > { %v575_v2 = vpack.c.bf16 %v385_v0, %v384_v63  ;;  %v382_v10 = vmax.f32 %v366_v6, 0.0 }
  0xbe   : > { %v346_v4 = vpop.f32.mrf.mxu2 }
  0xbf   : > { %583 = vst [vmem:[%s707_s19 + $0x10] sm:$0xff] %v575_v2   ;;  %v347_v9 = vadd.f32 %v604_v44, %v346_v4 }
  0xc0   : > { %v338_v5 = vpop.f32.mrf.mxu0 }
  0xc1   : > { %v339_v7 = vadd.f32 %v604_v44, %v338_v5  ;;  %v376_v14 = vadd.f32 %v375_v3, %v347_v9 }
  0xc3   : > { %v368_v8 = vadd.f32 %v367_v41, %v339_v7  ;;  %v386_v18 = vmax.f32 %v376_v14, 0.0 }
  0xc4   : > { %v377_v16 = vpop.f32.mrf.mxu3 }
  0xc5   : > { %v383_v11 = vmax.f32 %v368_v8, 0.0 }
  0xc6   : > { %v348_v13 = vpop.f32.mrf.mxu2 }
  0xc7   : > { %v570_v12 = vpack.c.bf16 %v383_v11, %v382_v10  ;;  %v349_v15 = vadd.f32 %v604_v44, %v348_v13 }
  0xc9   : > { %582 = vst [vmem:[%s707_s19 + $0x8] sm:$0xff] %v570_v12   ;;  %v378_v17 = vadd.f32 %v377_v16, %v349_v15 }
  0xcb   : > { %v387_v19 = vmax.f32 %v378_v17, 0.0 }
  0xcd   : > { %v580_v20 = vpack.c.bf16 %v387_v19, %v386_v18 }
  0xcf   : > { %584 = vst [vmem:[%s707_s19 + $0x18] sm:$0xff] %v580_v20  }
  0xd0 PF: > { %s13_s12 = sadd.s32 1, %s611_s12  }
  0xd1   : > { %p10_p4 = scmp.ge.s32.totalorder %s13_s12, 4  }
  0xd3   :  { %12 = sbr.rel (!%p10_p4) target bundleno = 1 (0x1), region = 62 }

// kernel: resnext_bottom_forward.6
= control target key start
LH: loop header
LB: loop body
LE: loop exit
PB: predicated region body
PF: predicated region fallthrough
CT: control target
= control target key end

     0   :  { %s310_s6 = smov 0   ;;  %s343_s0 = inlined_call_operand.vmem [shape: bf16[32,1152], index: 0, kind: input, shape index: {}]   ;;  %s344_s1 = inlined_call_operand.vmem [shape: bf16[32,128], index: 1, kind: output, shape index: {}]  }
   0x1 LB: > { %s263_s7 = sadd.s32 4294967295, %s298_s6   ;;  %p267_p0 = scmp.ge.s32.totalorder %s298_s6, 1  ;;  %s298_s6 = sphi %s310_s6, %s11_s6  }
   0x2   : > { %p89_p1 = scmp.lt.s32.totalorder %s298_s6, 3 }
   0x4   : > { %p90_p2 = pnand %p267_p0, %p89_p1 }
   0x5   : > { %s268_s8 = sshll.u32 (!%p90_p2), %s263_s7, 1 }
   0x6   : > { %93 = sbr.rel (%p90_p2) target bundleno = 38 (0x26), region = 24  ;;  %p111_p3 = scmp.lt.s32.totalorder (!%p90_p2), %s268_s8, 3 }
   0xb   : > { %s346_s8 = smov (!%p111_p3, %s268_s8), 3 }
   0xc   : > { %s283_s9 = smul.u32 36, %s346_s8  ;;  %s271_s13 = sshll.u32 %s346_s8, 2 }
   0xd   : > { %s121_s16 = scalar_lea.vmem %s344_s1, %s271_s13 }
   0xe   : > { %s324_s12 = scalar_lea.vmem %s343_s0, %s283_s9 }
   0xf   : > { %v275_v0 = vld [vmem:[%s324_s12] sm:$0xff]   ;;  %v135_v2 = vld [vmem:[%s324_s12 + $0x8] sm:$0xff]   ;;  %v155_v10 = vld [vmem:[%s324_s12 + $0x10] sm:$0xff]  }
  0x10   : > { %v124_v1 = vld [vmem:[%s324_s12 + $0x24] sm:$0xff]   ;;  %v276_v3 = vunpack.c.l.bf16 %v275_v0  ;;  %v277_v4 = vunpack.c.h.bf16 %v275_v0  ;;  %v136_v7 = vld [vmem:[%s324_s12 + $0x2c] sm:$0xff]   ;;  %v139_v8 = vunpack.c.l.bf16 %v135_v2  ;;  %v156_v11 = vld [vmem:[%s324_s12 + $0x34] sm:$0xff]   ;;  %v149_v14 = vunpack.c.h.bf16 %v135_v2 }
  0x11   : > { %v128_v5 = vunpack.c.l.bf16 %v124_v1  ;;  %v130_v6 = vunpack.c.h.bf16 %v124_v1  ;;  %v140_v9 = vunpack.c.l.bf16 %v136_v7  ;;  %v150_v15 = vunpack.c.h.bf16 %v136_v7  ;;  %v175_v20 = vld [vmem:[%s324_s12 + $0x18] sm:$0xff]   ;;  %v195_v30 = vld [vmem:[%s324_s12 + $0x20] sm:$0xf]  ;;  %v196_v31 = vld [vmem:[%s324_s12 + $0x44] sm:$0xf] }
  0x12   : > { %v131_v12 = vmax.f32 %v276_v3, %v277_v4  ;;  %v159_v18 = vunpack.c.l.bf16 %v155_v10  ;;  %v160_v19 = vunpack.c.l.bf16 %v156_v11  ;;  %v176_v21 = vld [vmem:[%s324_s12 + $0x3c] sm:$0xff]   ;;  %v169_v24 = vunpack.c.h.bf16 %v155_v10 }
  0x13   : > { %v132_v13 = vmax.f32 %v128_v5, %v130_v6  ;;  %v170_v25 = vunpack.c.h.bf16 %v156_v11  ;;  %v179_v28 = vunpack.c.l.bf16 %v175_v20  ;;  %v180_v29 = vunpack.c.l.bf16 %v176_v21 }
  0x14   : > { %v141_v16 = vmax.f32 %v131_v12, %v139_v8  ;;  %v189_v34 = vunpack.c.h.bf16 %v175_v20  ;;  %v190_v35 = vunpack.c.h.bf16 %v176_v21  ;;  %v199_v38 = vunpack.c.l.bf16 %v195_v30 }
  0x15   : > { %v142_v17 = vmax.f32 %v132_v13, %v140_v9  ;;  %v200_v39 = vunpack.c.l.bf16 %v196_v31 }
  0x16   : > { %v151_v22 = vmax.f32 %v141_v16, %v149_v14 }
  0x17   : > { %v152_v23 = vmax.f32 %v142_v17, %v150_v15 }
  0x18   : > { %v161_v26 = vmax.f32 %v151_v22, %v159_v18 }
  0x19   : > { %v162_v27 = vmax.f32 %v152_v23, %v160_v19 }
  0x1a   : > { %v171_v32 = vmax.f32 %v161_v26, %v169_v24 }
  0x1b   : > { %v172_v33 = vmax.f32 %v162_v27, %v170_v25 }
  0x1c   : > { %v181_v36 = vmax.f32 %v171_v32, %v179_v28 }
  0x1d   : > { %v182_v37 = vmax.f32 %v172_v33, %v180_v29 }
  0x1e   : > { %v191_v40 = vmax.f32 %v181_v36, %v189_v34 }
  0x1f   : > { %v192_v41 = vmax.f32 %v182_v37, %v190_v35 }
  0x20   : > { %v201_v42 = vmax.f32 %v191_v40, %v199_v38 }
  0x21   : > { %v202_v43 = vmax.f32 %v192_v41, %v200_v39 }
  0x23   : > { %v281_v44 = vpack.c.bf16 %v202_v43, %v201_v42 }
  0x25   : > { %282 = vst [vmem:[%s121_s16] sm:$0xff] %v281_v44  }
  0x26 PF: > { %s11_s6 = sadd.s32 1, %s298_s6  }
  0x27   : > { %p8_p4 = scmp.ge.s32.totalorder %s11_s6, 4  }
  0x29   :  { %10 = sbr.rel (!%p8_p4) target bundleno = 1 (0x1), region = 54 }

// kernel: resnext_bottom_forward.7
= control target key start
LH: loop header
LB: loop body
LE: loop exit
PB: predicated region body
PF: predicated region fallthrough
CT: control target
= control target key end

     0   :  { %s424_s12 = smov 0   ;;  %s468_s0 = inlined_call_operand.vmem [shape: bf16[32,128], index: 0, kind: input, shape index: {}]   ;;  %s469_s1 = inlined_call_operand.vmem [shape: bf16[128,128], index: 1, kind: input, shape index: {}]   ;;  %s470_s2 = inlined_call_operand.vmem [shape: f32[1,128], index: 2, kind: input, shape index: {}]   ;;  %s471_s3 = inlined_call_operand.vmem [shape: bf16[32,128], index: 3, kind: output, shape index: {}]  }
   0x1 LB: > { %s326_s13 = sadd.s32 4294967295, %s402_s12   ;;  %p330_p0 = scmp.ge.s32.totalorder %s402_s12, 1  ;;  %s402_s12 = sphi %s424_s12, %s13_s12  }
   0x2   : > { %p138_p1 = scmp.lt.s32.totalorder %s402_s12, 3 }
   0x4   : > { %p139_p2 = pnand %p330_p0, %p138_p1 }
   0x5   : > { %s331_s22 = sshll.u32 (!%p139_p2), %s326_s13, 1 }
   0x6   : > { %142 = sbr.rel (%p139_p2) target bundleno = 184 (0xb8), region = 32  ;;  %p163_p3 = scmp.lt.s32.totalorder (!%p139_p2), %s331_s22, 3 }
   0xb   : > { %v381_v0 = vld [vmem:[%s469_s1 + $0x38] sm:$0xff]  ;;  %v380_v1 = vld [vmem:[%s469_s1 + $0x30] sm:$0xff]  ;;  %v379_v2 = vld [vmem:[%s469_s1 + $0x28] sm:$0xff]  ;;  %s473_s22 = smov (!%p163_p3, %s331_s22), 3 }
   0xc   : > { %250 = vmatpush.bf16.msra.mxu0 %v381_v0  ;;  %v378_v3 = vld [vmem:[%s469_s1 + $0x20] sm:$0xff]  ;;  %v377_v4 = vld [vmem:[%s469_s1 + $0x18] sm:$0xff]  ;;  %v376_v5 = vld [vmem:[%s469_s1 + $0x10] sm:$0xff]  ;;  %s332_s29 = sshll.u32 %s473_s22, 2 }
   0xd   : > { %v375_v6 = vld [vmem:[%s469_s1 + $0x8] sm:$0xff]  ;;  %v374_v7 = vld [vmem:[%s469_s1] sm:$0xff]  ;;  %s166_s7 = scalar_lea.vmem %s468_s0, %s332_s29  ;;  %s172_s13 = scalar_lea.vmem %s471_s3, %s332_s29 }
   0xe   : > { %v373_v8 = vld [vmem:[%s166_s7] sm:$0xff] }
   0xf   : > { %v395_v10 = vld [vmem:[%s470_s2] ss:$0 sm:$0xff] }
  0x10   : > { %251 = vmatpush.bf16.msra.mxu0 %v380_v1 }
  0x14   : > { %252 = vmatpush.bf16.msra.mxu0 %v379_v2 }
  0x18   : > { %253 = vmatpush.bf16.msra.mxu0 %v378_v3 }
  0x1c   : > { %254 = vmatpush.bf16.msra.mxu0 %v377_v4 }
  0x20   : > { %255 = vmatpush.bf16.msra.mxu0 %v376_v5 }
  0x24   : > { %256 = vmatpush.bf16.msra.mxu0 %v375_v6 }
  0x28   : > { %257 = vmatpush.bf16.msra.mxu0 %v374_v7 }
  0x2b   : > { %258 = vmatmul.bf16.vlgmr.msra.gmra.mxu0 %v373_v8 }
  0xa8   : > { %v259_v9 = vpop.f32.mrf.mxu0 }
  0xa9   : > { %v260_v11 = vadd.f32 %v395_v10, %v259_v9 }
  0xab   : > { %v264_v14 = vmax.f32 %v260_v11, 0.0 }
  0xb0   : > { %v261_v12 = vpop.f32.mrf.mxu0 }
  0xb1   : > { %v262_v13 = vadd.f32 %v395_v10, %v261_v12 }
  0xb3   : > { %v265_v15 = vmax.f32 %v262_v13, 0.0 }
  0xb5   : > { %v385_v16 = vpack.c.bf16 %v265_v15, %v264_v14 }
  0xb7   : > { %386 = vst [vmem:[%s172_s13] sm:$0xff] %v385_v16  }
  0xb8 PF: > { %s13_s12 = sadd.s32 1, %s402_s12  }
  0xb9   : > { %p10_p4 = scmp.ge.s32.totalorder %s13_s12, 4  }
  0xbb   :  { %12 = sbr.rel (!%p10_p4) target bundleno = 1 (0x1), region = 62 }

// kernel: resnext_bottom_forward.8
= control target key start
LH: loop header
LB: loop body
LE: loop exit
PB: predicated region body
PF: predicated region fallthrough
CT: control target
= control target key end

     0   :  { %s1707_s12 = smov 0   ;;  %s2034_s0 = inlined_call_operand.vmem [shape: bf16[2,42,128], index: 0, kind: input, shape index: {}]   ;;  %s2035_s1 = inlined_call_operand.vmem [shape: bf16[9,128,128], index: 1, kind: input, shape index: {}]   ;;  %s2036_s2 = inlined_call_operand.vmem [shape: f32[1,128], index: 2, kind: input, shape index: {}]   ;;  %s2037_s3 = inlined_call_operand.vmem [shape: bf16[2,24,128], index: 3, kind: output, shape index: {}]  }
   0x1 LB: > { %s1149_s13 = sadd.s32 4294967295, %s1685_s12   ;;  %p1153_p0 = scmp.ge.s32.totalorder %s1685_s12, 1  ;;  %s1685_s12 = sphi %s1707_s12, %s13_s12  }
   0x2   : > { %p137_p1 = scmp.lt.s32.totalorder %s1685_s12, 3 }
   0x4   : > { %p138_p2 = pnand %p1153_p0, %p137_p1 }
   0x5   : > { %p161_p3 = scmp.lt.s32.totalorder (!%p138_p2), %s1149_s13, 1 }
   0x6   : > { %141 = sbr.rel (%p138_p2) target bundleno = 250 (0xfa), region = 32 }
   0xb   : > { %v1589_v0 = vld [vmem:[%s2035_s1 + $0x78] sm:$0xff]  ;;  %v1588_v4 = vld [vmem:[%s2035_s1 + $0x70] sm:$0xff]  ;;  %s2039_s13 = smov (!%p161_p3, %s1149_s13), 1  ;;  %v1587_v8 = vld [vmem:[%s2035_s1 + $0x68] sm:$0xff]  ;;  %vm218_vm0 = vsmask.f32 7424 }
   0xc   : > { %v1581_v1 = vld [vmem:[%s2035_s1 + $0x38] sm:$0xff]  ;;  %284 = vmatpush.bf16.msra.mxu0 %v1589_v0  ;;  %v1580_v5 = vld [vmem:[%s2035_s1 + $0x30] sm:$0xff]  ;;  %s1668_s30 = smul.u32 24, %s2039_s13  ;;  %v1579_v9 = vld [vmem:[%s2035_s1 + $0x28] sm:$0xff]  ;;  %vm392_vm1 = vcmask 1046528   ;;  %vm492_vm2 = vcmask 1044480  }
   0xd   : > { %v1597_v2 = vld [vmem:[%s2035_s1 + $0xb8] sm:$0xff]  ;;  %353 = vmatpush.bf16.msra.mxu1 %v1581_v1  ;;  %v1596_v6 = vld [vmem:[%s2035_s1 + $0xb0] sm:$0xff]  ;;  %v1595_v10 = vld [vmem:[%s2035_s1 + $0xa8] sm:$0xff]  ;;  %vm588_vm3 = vsmask.f32 4352  ;;  %vm798_vm4 = vcmask 1045504  }
   0xe   : > { %v1605_v3 = vld [vmem:[%s2035_s1 + $0xf8] sm:$0xff]  ;;  %446 = vmatpush.bf16.msra.mxu2 %v1597_v2  ;;  %v1604_v7 = vld [vmem:[%s2035_s1 + $0xf0] sm:$0xff]  ;;  %v1603_v11 = vld [vmem:[%s2035_s1 + $0xe8] sm:$0xff]  ;;  %s1757_s16 = scalar_lea.vmem %s2034_s0, %s1668_s30  ;;  %vm894_vm5 = vsmask.f32 5376  ;;  %s1669_s18 = smul.u32 12, %s2039_s13 }
   0xf   : > { %546 = vmatpush.bf16.msra.mxu3 %v1605_v3  ;;  %v1586_v12 = vld [vmem:[%s2035_s1 + $0x60] sm:$0xff]  ;;  %v1772_v16 = vld [vmem:[%s1757_s16 + $0x8] sm:$0xff]   ;;  %v1585_v18 = vld [vmem:[%s2035_s1 + $0x58] sm:$0xff] }
  0x10   : > { %285 = vmatpush.bf16.msra.mxu0 %v1588_v4  ;;  %v1578_v13 = vld [vmem:[%s2035_s1 + $0x20] sm:$0xff]  ;;  %v190_v17 = vld [vmem:[%s1757_s16 + $0xc] sm:$0x1]  ;;  %v1577_v19 = vld [vmem:[%s2035_s1 + $0x18] sm:$0xff]  ;;  %v1782_v20 = vunpack.c.l.b16 %v1772_v16  ;;  %s170_s21 = scalar_lea.vmem %s2037_s3, %s1669_s18 }
  0x11   : > { %354 = vmatpush.bf16.msra.mxu1 %v1580_v5  ;;  %v1594_v14 = vld [vmem:[%s2035_s1 + $0xa0] sm:$0xff]  ;;  %v215_v21 = vunpack.c.l.b16 %v190_v17  ;;  %v1593_v22 = vld [vmem:[%s2035_s1 + $0x98] sm:$0xff]  ;;  %v468_v27 = vld [vmem:[%s1757_s16 + $0xc] sm:$0x7] }
  0x12   : > { %447 = vmatpush.bf16.msra.mxu2 %v1596_v6  ;;  %v1602_v15 = vld [vmem:[%s2035_s1 + $0xe0] sm:$0xff]  ;;  %v1601_v23 = vld [vmem:[%s2035_s1 + $0xd8] sm:$0xff]  ;;  %v1584_v28 = vld [vmem:[%s2035_s1 + $0x50] sm:$0xff]  ;;  %v489_v37 = vunpack.c.l.b16 %v468_v27  ;;  %v302_v27 = vpack.c.b16 %v1782_v20, %v1782_v20 }
  0x13   : > { %547 = vmatpush.bf16.msra.mxu3 %v1604_v7  ;;  %v1791_v24 = vld [vmem:[%s1757_s16] sm:$0xff]   ;;  %v1576_v29 = vld [vmem:[%s2035_s1 + $0x10] sm:$0xff]  ;;  %v1803_v30 = vpack.c.b16 %v215_v21, %v1782_v20  ;;  %v1583_v38 = vld [vmem:[%s2035_s1 + $0x48] sm:$0xff] }
  0x14   : > { %286 = vmatpush.bf16.msra.mxu0 %v1587_v8  ;;  %v371_v25 = vld [vmem:[%s1757_s16] sm:$0xe]  ;;  %v222_v31 = vshll.u32 %v1791_v24, 16  ;;  %v1592_v32 = vld [vmem:[%s2035_s1 + $0x90] sm:$0xff]  ;;  %v1813_v34 = vunpack.c.h.b16 %v1791_v24  ;;  %v1575_v39 = vld [vmem:[%s2035_s1 + $0x8] sm:$0xff]  ;;  %v220_v40 = vshrl.u32 %v1791_v24, 16  ;;  %v1834_v47 = vpack.c.b16 %v489_v37, %v1782_v20 }
  0x15   : > { %355 = vmatpush.bf16.msra.mxu1 %v1579_v9  ;;  %v467_v26 = vld [vmem:[%s1757_s16] sm:$0x8]  ;;  %v1600_v33 = vld [vmem:[%s2035_s1 + $0xd0] sm:$0xff]  ;;  %v390_v35 = vunpack.c.l.b16 %v371_v25  ;;  %v227_v42 = vshll.u32 %v1803_v30, 16  ;;  %v1591_v43 = vld [vmem:[%s2035_s1 + $0x88] sm:$0xff]  ;;  %v394_v55 = vrot.slane %v1803_v30, 1 }
  0x16   : > { %448 = vmatpush.bf16.msra.mxu2 %v1595_v10  ;;  %v488_v36 = vunpack.c.l.b16 %v467_v26  ;;  %v224_v41 = vrot.slane %v222_v31, 1  ;;  %v1599_v44 = vld [vmem:[%s2035_s1 + $0xc8] sm:$0xff]  ;;  %v1582_v48 = vld [vmem:[%s2035_s1 + $0x40] sm:$0xff]  ;;  %v494_v57 = vrot.slane %v1834_v47, 3  ;;  %v1613_v58 = vld [vmem:[%s2035_s1 + $0x138] sm:$0xff] }
  0x17   : > { %548 = vmatpush.bf16.msra.mxu3 %v1603_v11  ;;  %v391_v45 = vpack.c.b16 %v1813_v34, %v390_v35  ;;  %v1574_v49 = vld [vmem:[%s2035_s1] sm:$0xff]  ;;  %v1842_v51 = vrot.slane %v227_v42, 1  ;;  %v1621_v59 = vld [vmem:[%s2035_s1 + $0x178] sm:$0xff]  ;;  %v1612_v1 = vld [vmem:[%s2035_s1 + $0x130] sm:$0xff] }
  0x18   : > { %287 = vmatpush.bf16.msra.mxu0 %v1586_v12  ;;  %v1831_v46 = vpack.c.b16 %v1813_v34, %v488_v36  ;;  %v225_v50 = vor.u32 %v224_v41, %v220_v40  ;;  %v1590_v52 = vld [vmem:[%s2035_s1 + $0x80] sm:$0xff]  ;;  %v1629_v62 = vld [vmem:[%s2035_s1 + $0x1b8] sm:$0xff]  ;;  %v1620_v2 = vld [vmem:[%s2035_s1 + $0x170] sm:$0xff]  ;;  %v601_v40 = vshll.u32 %v1772_v16, 16 }
  0x19   : > { %356 = vmatpush.bf16.msra.mxu1 %v1578_v13  ;;  %v1598_v53 = vld [vmem:[%s2035_s1 + $0xc0] sm:$0xff]  ;;  %v393_v54 = vrot.slane %v391_v45, 1  ;;  %v1637_v0 = vld [vmem:[%s2035_s1 + $0x1f8] sm:$0xff]  ;;  %v1628_v3 = vld [vmem:[%s2035_s1 + $0x1b0] sm:$0xff] }
  0x1a   : > { %449 = vmatpush.bf16.msra.mxu2 %v1594_v14  ;;  %v493_v56 = vrot.slane %v1831_v46, 3  ;;  %v230_v60 = vsel %vm218_vm0, %v225_v50, %v1842_v51  ;;  %v1636_v4 = vld [vmem:[%s2035_s1 + $0x1f0] sm:$0xff]  ;;  %v1611_v5 = vld [vmem:[%s2035_s1 + $0x128] sm:$0xff]  ;;  %v1610_v9 = vld [vmem:[%s2035_s1 + $0x120] sm:$0xff]  ;;  %v231_v14 = vshrl.u32 %v1803_v30, 16  ;;  %v590_v37 = vshrl.u32 %v1831_v46, 16 }
  0x1b   : > { %549 = vmatpush.bf16.msra.mxu3 %v1602_v15  ;;  %v395_v61 = vsel %vm392_vm1, %v393_v54, %v394_v55  ;;  %v1619_v6 = vld [vmem:[%s2035_s1 + $0x168] sm:$0xff]  ;;  %v1618_v10 = vld [vmem:[%s2035_s1 + $0x160] sm:$0xff]  ;;  %v873_v13 = vld [vmem:[%s1757_s16 + $0x10] sm:$0x7]  ;;  %v586_v15 = vunpack.c.h.b16 %v1772_v16 }
  0x1c   : > { %288 = vmatpush.bf16.msra.mxu0 %v1585_v18  ;;  %v495_v63 = vsel %vm492_vm2, %v493_v56, %v494_v57  ;;  %v1627_v7 = vld [vmem:[%s2035_s1 + $0x1a8] sm:$0xff]  ;;  %v767_v11 = vld [vmem:[%s1757_s16 + $0x4] sm:$0xc]  ;;  %v1617_v25 = vld [vmem:[%s2035_s1 + $0x158] sm:$0xff]  ;;  %v233_v26 = vor.u32 %v231_v14, %v1842_v51 }
  0x1d   : > { %357 = vmatpush.bf16.msra.mxu1 %v1577_v19  ;;  %v1635_v8 = vld [vmem:[%s2035_s1 + $0x1e8] sm:$0xff]  ;;  %v1626_v17 = vld [vmem:[%s2035_s1 + $0x1a0] sm:$0xff]  ;;  %v770_v31 = vld [vmem:[%s1757_s16 + $0x10] sm:$0x3]  ;;  %v695_v14 = vpack.c.b16 %v586_v15, %v586_v15 }
  0x1e   : > { %450 = vmatpush.bf16.msra.mxu2 %v1593_v22  ;;  %v1905_v12 = vld [vmem:[%s1757_s16 + $0x8] sm:$0xff]   ;;  %v1634_v18 = vld [vmem:[%s2035_s1 + $0x1e0] sm:$0xff]  ;;  %v792_v22 = vunpack.c.l.b16 %v767_v11  ;;  %v1608_v35 = vld [vmem:[%s2035_s1 + $0x110] sm:$0xff]  ;;  %v795_v41 = vunpack.c.l.b16 %v770_v31 }
  0x1f   : > { %550 = vmatpush.bf16.msra.mxu3 %v1601_v23  ;;  %v1652_v19 = vunpack.c.l.b16 %v1905_v12  ;;  %v1653_v21 = vunpack.c.h.b16 %v1905_v12  ;;  %v892_v23 = vunpack.c.l.b16 %v873_v13  ;;  %v1616_v36 = vld [vmem:[%s2035_s1 + $0x150] sm:$0xff]  ;;  %v1607_v47 = vld [vmem:[%s2035_s1 + $0x108] sm:$0xff]  ;;  %v1641_v13 = vld [vmem:[%s2035_s1 + $0x218] sm:$0xff] }
  0x20   : > { %289 = vmatpush.bf16.msra.mxu0 %v1584_v28  ;;  %v1625_v28 = vld [vmem:[%s2035_s1 + $0x198] sm:$0xff]  ;;  %v1624_v42 = vld [vmem:[%s2035_s1 + $0x190] sm:$0xff]  ;;  %v1623_v54 = vld [vmem:[%s2035_s1 + $0x188] sm:$0xff] }
  0x21   : > { %358 = vmatpush.bf16.msra.mxu1 %v1576_v29  ;;  %v1633_v29 = vld [vmem:[%s2035_s1 + $0x1d8] sm:$0xff]  ;;  %v1632_v30 = vld [vmem:[%s2035_s1 + $0x1d0] sm:$0xff] }
  0x22   : > { %451 = vmatpush.bf16.msra.mxu2 %v1592_v32  ;;  %v1936_v32 = vpack.c.b16 %v1652_v19, %v792_v22  ;;  %v1644_v11 = vld [vmem:[%s2035_s1 + $0x230] sm:$0xff]  ;;  %v1638_v22 = vld [vmem:[%s2035_s1 + $0x200] sm:$0xff] }
  0x23   : > { %551 = vmatpush.bf16.msra.mxu3 %v1600_v33  ;;  %v1938_v33 = vpack.c.b16 %v892_v23, %v1653_v21 }
  0x24   : > { %290 = vmatpush.bf16.msra.mxu0 %v1583_v38  ;;  %v593_v38 = vshll.u32 %v1831_v46, 16 }
  0x25   : > { %359 = vmatpush.bf16.msra.mxu1 %v1575_v39  ;;  %v598_v39 = vshrl.u32 %v1772_v16, 16  ;;  %v904_v45 = vshrl.u32 %v1938_v33, 16  ;;  %v907_v46 = vshll.u32 %v1938_v33, 16  ;;  %v1639_v16 = vld [vmem:[%s2035_s1 + $0x208] sm:$0xff] }
  0x26   : > { %452 = vmatpush.bf16.msra.mxu2 %v1591_v43  ;;  %v896_v43 = vshrl.u32 %v1936_v32, 16  ;;  %v595_v50 = vrot.slane %v593_v38, 4 }
  0x27   : > { %552 = vmatpush.bf16.msra.mxu3 %v1599_v44  ;;  %v899_v44 = vshll.u32 %v1936_v32, 16  ;;  %v600_v51 = vrot.slane %v598_v39, 3 }
  0x28   : > { %291 = vmatpush.bf16.msra.mxu0 %v1582_v48  ;;  %v1615_v48 = vld [vmem:[%s2035_s1 + $0x148] sm:$0xff]  ;;  %v898_v56 = vrot.slane %v896_v43, 2 }
  0x29   : > { %360 = vmatpush.bf16.msra.mxu1 %v1574_v49  ;;  %v592_v49 = vrot.slane %v590_v37, 3 }
  0x2a   : > { %453 = vmatpush.bf16.msra.mxu2 %v1590_v52  ;;  %v603_v52 = vrot.slane %v601_v40, 4 }
  0x2b   : > { %553 = vmatpush.bf16.msra.mxu3 %v1598_v53  ;;  %292 = vmatmul.bf16.vlgmr.msra.gmra.mxu0 %v230_v60  ;;  %v797_v53 = vpack.c.b16 %v795_v41, %v1653_v21  ;;  %v1606_v60 = vld [vmem:[%s2035_s1 + $0x100] sm:$0xff] }
  0x2c   : > { %656 = vmatpush.bf16.msrb.mxu0 %v1613_v58  ;;  %361 = vmatmul.bf16.vlgmr.msra.gmra.mxu1 %v1791_v24  ;;  %v1609_v24 = vld [vmem:[%s2035_s1 + $0x118] sm:$0xff]  ;;  %v906_v58 = vrot.slane %v904_v45, 2 }
  0x2d   : > { %746 = vmatpush.bf16.msrb.mxu1 %v1621_v59  ;;  %454 = vmatmul.bf16.vlgmr.msra.gmra.mxu2 %v395_v61  ;;  %v909_v59 = vrot.slane %v907_v46, 3  ;;  %v1614_v61 = vld [vmem:[%s2035_s1 + $0x140] sm:$0xff] }
  0x2e   : > { %554 = vmatmul.bf16.vlgmr.msra.gmra.mxu3 %v495_v63  ;;  %852 = vmatpush.bf16.msrb.mxu2 %v1629_v62  ;;  %v1645_v62 = vld [vmem:[%s2035_s1 + $0x238] sm:$0xff]  ;;  %v596_v63 = vor.u32 %v595_v50, %v592_v49 }
  0x2f   : > { %962 = vmatpush.bf16.msrb.mxu3 %v1637_v0  ;;  %v604_v0 = vor.u32 %v603_v52, %v600_v51 }
  0x30   : > { %657 = vmatpush.bf16.msrb.mxu0 %v1612_v1  ;;  %v1622_v1 = vld [vmem:[%s2035_s1 + $0x180] sm:$0xff] }
  0x31   : > { %747 = vmatpush.bf16.msrb.mxu1 %v1620_v2  ;;  %v1630_v2 = vld [vmem:[%s2035_s1 + $0x1c0] sm:$0xff] }
  0x32   : > { %853 = vmatpush.bf16.msrb.mxu2 %v1628_v3  ;;  %v799_v3 = vrot.slane %v1936_v32, 2 }
  0x33   : > { %963 = vmatpush.bf16.msrb.mxu3 %v1636_v4  ;;  %v800_v4 = vrot.slane %v797_v53, 2 }
  0x34   : > { %658 = vmatpush.bf16.msrb.mxu0 %v1611_v5 }
  0x35   : > { %748 = vmatpush.bf16.msrb.mxu1 %v1619_v6  ;;  %v910_v6 = vor.u32 %v909_v59, %v906_v58 }
  0x36   : > { %854 = vmatpush.bf16.msrb.mxu2 %v1627_v7  ;;  %v694_v7 = vpack.c.b16 %v1782_v20, %v1813_v34  ;;  %v1643_v20 = vld [vmem:[%s2035_s1 + $0x228] sm:$0xff]  ;;  %v1642_v34 = vld [vmem:[%s2035_s1 + $0x220] sm:$0xff] }
  0x37   : > { %964 = vmatpush.bf16.msrb.mxu3 %v1635_v8  ;;  %v605_v8 = vsel %vm588_vm3, %v596_v63, %v604_v0 }
  0x38   : > { %659 = vmatpush.bf16.msrb.mxu0 %v1610_v9  ;;  %v801_v9 = vsel %vm798_vm4, %v799_v3, %v800_v4 }
  0x39   : > { %749 = vmatpush.bf16.msrb.mxu1 %v1618_v10 }
  0x3a   : > { %855 = vmatpush.bf16.msrb.mxu2 %v1626_v17  ;;  %v1640_v17 = vld [vmem:[%s2035_s1 + $0x210] sm:$0xff] }
  0x3b   : > { %965 = vmatpush.bf16.msrb.mxu3 %v1634_v18  ;;  %297 = vmatmul.bf16.gmra.mxu0 %v233_v26  ;;  %v983_v18 = vld [vmem:[%s1757_s16 + $0x4] sm:$0x8] }
  0x3c   : > { %660 = vmatpush.bf16.msrb.mxu0 %v1609_v24  ;;  %366 = vmatmul.bf16.gmra.mxu1 %v302_v27  ;;  %v1002_v21 = vunpack.c.l.b16 %v983_v18  ;;  %v1005_v24 = vrot.slane %v1938_v33, 3 }
  0x3d   : > { %750 = vmatpush.bf16.msrb.mxu1 %v1617_v25  ;;  %459 = vmatmul.bf16.gmra.mxu2 %v394_v55  ;;  %v1631_v55 = vld [vmem:[%s2035_s1 + $0x1c8] sm:$0xff] }
  0x3e   : > { %559 = vmatmul.bf16.gmra.mxu3 %v494_v57  ;;  %856 = vmatpush.bf16.msrb.mxu2 %v1625_v28  ;;  %v901_v57 = vrot.slane %v899_v44, 3  ;;  %v1003_v15 = vpack.c.b16 %v1652_v19, %v1002_v21 }
  0x3f   : > { %966 = vmatpush.bf16.msrb.mxu3 %v1633_v29 }
  0x40   : > { %661 = vmatpush.bf16.msrb.mxu0 %v1608_v35  ;;  %v902_v5 = vor.u32 %v901_v57, %v898_v56  ;;  %v1004_v23 = vrot.slane %v1003_v15, 3 }
  0x41   : > { %751 = vmatpush.bf16.msrb.mxu1 %v1616_v36 }
  0x42   : > { %857 = vmatpush.bf16.msrb.mxu2 %v1624_v42  ;;  %v911_v10 = vsel %vm894_vm5, %v902_v5, %v910_v6  ;;  %v1006_v25 = vsel %vm492_vm2, %v1004_v23, %v1005_v24 }
  0x43   : > { %967 = vmatpush.bf16.msrb.mxu3 %v1632_v30 }
  0x44   : > { %662 = vmatpush.bf16.msrb.mxu0 %v1607_v47 }
  0x45   : > { %752 = vmatpush.bf16.msrb.mxu1 %v1615_v48 }
  0x46   : > { %858 = vmatpush.bf16.msrb.mxu2 %v1623_v54 }
  0x47   : > { %968 = vmatpush.bf16.msrb.mxu3 %v1631_v55 }
  0x48   : > { %663 = vmatpush.bf16.msrb.mxu0 %v1606_v60 }
  0x49   : > { %753 = vmatpush.bf16.msrb.mxu1 %v1614_v61 }
  0x4a   : > { %859 = vmatpush.bf16.msrb.mxu2 %v1622_v1 }
  0x4b   : > { %969 = vmatpush.bf16.msrb.mxu3 %v1630_v2  ;;  %664 = vmatmul.bf16.vlgmr.msrb.gmra.mxu0 %v605_v8  ;;  %v1678_v8 = vld [vmem:[%s2036_s2] ss:$0 sm:$0xff] }
  0x4c   : > { %1057 = vmatpush.bf16.msra.mxu0 %v1645_v62  ;;  %754 = vmatmul.bf16.vlgmr.msrb.gmra.mxu1 %v694_v7 }
  0x4d   : > { %1660 = vmatpush.bf16.msra.mxu1 %v1645_v62  ;;  %860 = vmatmul.bf16.vlgmr.msrb.gmra.mxu2 %v801_v9 }
  0x4e   : > { %970 = vmatmul.bf16.vlgmr.msrb.gmra.mxu3 %v911_v10 }
  0x50   : > { %1058 = vmatpush.bf16.msra.mxu0 %v1644_v11 }
  0x51   : > { %1661 = vmatpush.bf16.msra.mxu1 %v1644_v11 }
  0x54   : > { %1059 = vmatpush.bf16.msra.mxu0 %v1643_v20 }
  0x55   : > { %1662 = vmatpush.bf16.msra.mxu1 %v1643_v20 }
  0x58   : > { %1060 = vmatpush.bf16.msra.mxu0 %v1642_v34 }
  0x59   : > { %1663 = vmatpush.bf16.msra.mxu1 %v1642_v34 }
  0x5b   : > { %669 = vmatmul.bf16.gmra.mxu0 %v604_v0 }
  0x5c   : > { %1061 = vmatpush.bf16.msra.mxu0 %v1641_v13  ;;  %759 = vmatmul.bf16.gmra.mxu1 %v695_v14 }
  0x5d   : > { %1664 = vmatpush.bf16.msra.mxu1 %v1641_v13  ;;  %865 = vmatmul.bf16.gmra.mxu2 %v800_v4 }
  0x5e   : > { %975 = vmatmul.bf16.gmra.mxu3 %v910_v6 }
  0x60   : > { %1062 = vmatpush.bf16.msra.mxu0 %v1640_v17 }
  0x61   : > { %1665 = vmatpush.bf16.msra.mxu1 %v1640_v17 }
  0x64   : > { %1063 = vmatpush.bf16.msra.mxu0 %v1639_v16 }
  0x65   : > { %1666 = vmatpush.bf16.msra.mxu1 %v1639_v16 }
  0x68   : > { %1064 = vmatpush.bf16.msra.mxu0 %v1638_v22 }
  0x69   : > { %1667 = vmatpush.bf16.msra.mxu1 %v1638_v22 }
  0x6b   : > { %1065 = vmatmul.bf16.vlgmr.msra.gmra.mxu0 %v1006_v25 }
  0x6c   : > { %1070 = vmatmul.bf16.vlgmr.msra.gmra.mxu1 %v1005_v24 }
  0xa8   : > { %v293_v26 = vpop.f32.mrf.mxu0 }
  0xa9   : > { %v362_v27 = vpop.f32.mrf.mxu1 }
  0xaa   : > { %v363_v53 = vadd.f32 %v362_v27, %v293_v26 }
  0xb0   : > { %v455_v28 = vpop.f32.mrf.mxu2  ;;  %v295_v19 = vpop.f32.mrf.mxu0 }
  0xb1   : > { %v555_v12 = vpop.f32.mrf.mxu3  ;;  %v364_v29 = vpop.f32.mrf.mxu1  ;;  %v464_v54 = vadd.f32 %v455_v28, %v363_v53 }
  0xb2   : > { %v365_v56 = vadd.f32 %v364_v29, %v295_v19 }
  0xb3   : > { %v564_v58 = vadd.f32 %v555_v12, %v464_v54 }
  0xb8   : > { %v457_v31 = vpop.f32.mrf.mxu2  ;;  %v298_v35 = vpop.f32.mrf.mxu0 }
  0xb9   : > { %v557_v32 = vpop.f32.mrf.mxu3  ;;  %v367_v36 = vpop.f32.mrf.mxu1  ;;  %v465_v59 = vadd.f32 %v457_v31, %v365_v56 }
  0xba   : > { %v368_v47 = vadd.f32 %v367_v36, %v298_v35 }
  0xbb   : > { %v565_v2 = vadd.f32 %v557_v32, %v465_v59 }
  0xc0   : > { %v460_v37 = vpop.f32.mrf.mxu2  ;;  %v300_v39 = vpop.f32.mrf.mxu0 }
  0xc1   : > { %v560_v38 = vpop.f32.mrf.mxu3  ;;  %v369_v33 = vpop.f32.mrf.mxu1  ;;  %v466_v48 = vadd.f32 %v460_v37, %v368_v47 }
  0xc3   : > { %v566_v55 = vadd.f32 %v560_v38, %v466_v48 }
  0xc8   : > { %v462_v40 = vpop.f32.mrf.mxu2  ;;  %v665_v42 = vpop.f32.mrf.mxu0 }
  0xc9   : > { %v562_v41 = vpop.f32.mrf.mxu3  ;;  %v755_v30 = vpop.f32.mrf.mxu1  ;;  %v674_v0 = vadd.f32 %v665_v42, %v564_v58 }
  0xcb   : > { %v764_v4 = vadd.f32 %v755_v30, %v674_v0 }
  0xd0   : > { %v861_v43 = vpop.f32.mrf.mxu2  ;;  %v667_v45 = vpop.f32.mrf.mxu0 }
  0xd1   : > { %v971_v44 = vpop.f32.mrf.mxu3  ;;  %v757_v46 = vpop.f32.mrf.mxu1  ;;  %v675_v5 = vadd.f32 %v667_v45, %v565_v2  ;;  %v870_v6 = vadd.f32 %v861_v43, %v764_v4 }
  0xd3   : > { %v765_v34 = vadd.f32 %v757_v46, %v675_v5  ;;  %v980_v14 = vadd.f32 %v971_v44, %v870_v6 }
  0xd8   : > { %v863_v49 = vpop.f32.mrf.mxu2  ;;  %v670_v51 = vpop.f32.mrf.mxu0 }
  0xd9   : > { %v973_v50 = vpop.f32.mrf.mxu3  ;;  %v760_v52 = vpop.f32.mrf.mxu1  ;;  %v676_v57 = vadd.f32 %v670_v51, %v566_v55  ;;  %v871_v17 = vadd.f32 %v863_v49, %v765_v34 }
  0xdb   : > { %v766_v1 = vadd.f32 %v760_v52, %v676_v57  ;;  %v981_v15 = vadd.f32 %v973_v50, %v871_v17 }
  0xe0   : > { %v866_v60 = vpop.f32.mrf.mxu2  ;;  %v672_v62 = vpop.f32.mrf.mxu0 }
  0xe1   : > { %v976_v61 = vpop.f32.mrf.mxu3  ;;  %v762_v63 = vpop.f32.mrf.mxu1  ;;  %v872_v3 = vadd.f32 %v866_v60, %v766_v1 }
  0xe3   : > { %v982_v7 = vadd.f32 %v976_v61, %v872_v3 }
  0xe8   : > { %v868_v9 = vpop.f32.mrf.mxu2  ;;  %v1066_v11 = vpop.f32.mrf.mxu0 }
  0xe9   : > { %v978_v10 = vpop.f32.mrf.mxu3  ;;  %v1071_v20 = vpop.f32.mrf.mxu1  ;;  %v1075_v21 = vadd.f32 %v1066_v11, %v980_v14 }
  0xea   : > { %v1077_v13 = vadd.f32 %v1071_v20, %v982_v7 }
  0xeb   : > { %v1082_v25 = vadd.f32 %v1678_v8, %v1075_v21 }
  0xec   : > { %v1084_v18 = vadd.f32 %v1678_v8, %v1077_v13 }
  0xed   : > { %v1085_v28 = vmax.f32 %v1082_v25, 0.0 }
  0xee   : > { %v1087_v16 = vmax.f32 %v1084_v18, 0.0 }
  0xf0   : > { %v1090_v22 = vpack.c.bf16 %v1087_v16, %v1087_v16  ;;  %v1068_v23 = vpop.f32.mrf.mxu0 }
  0xf1   : > { %v1073_v24 = vpop.f32.mrf.mxu1  ;;  %v1076_v26 = vadd.f32 %v1068_v23, %v981_v15 }
  0xf2   : > { %1093 = vst [vmem:[%s170_s21 + $0x8] sm:$0xf] %v1090_v22 }
  0xf3   : > { %v1083_v27 = vadd.f32 %v1678_v8, %v1076_v26 }
  0xf5   : > { %v1086_v12 = vmax.f32 %v1083_v27, 0.0 }
  0xf7   : > { %v1657_v19 = vpack.c.bf16 %v1086_v12, %v1085_v28 }
  0xf9   : > { %1658 = vst [vmem:[%s170_s21] sm:$0xff] %v1657_v19  }
  0xfa PF: > { %s13_s12 = sadd.s32 1, %s1685_s12  }
  0xfb   : > { %p10_p4 = scmp.ge.s32.totalorder %s13_s12, 4  }
  0xfd   :  { %12 = sbr.rel (!%p10_p4) target bundleno = 1 (0x1), region = 70 }

// kernel: resnext_bottom_forward.9
= control target key start
LH: loop header
LB: loop body
LE: loop exit
PB: predicated region body
PF: predicated region fallthrough
CT: control target
= control target key end

     0   :  { %s843_s18 = smov 0   ;;  %s1066_s0 = inlined_call_operand.vmem [shape: bf16[2,16,128], index: 0, kind: input, shape index: {}]   ;;  %s1067_s1 = inlined_call_operand.vmem [shape: bf16[2,16,128], index: 1, kind: input, shape index: {}]   ;;  %s1068_s2 = inlined_call_operand.vmem [shape: bf16[128,256], index: 2, kind: input, shape index: {}]   ;;  %s1069_s3 = inlined_call_operand.vmem [shape: bf16[128,256], index: 3, kind: input, shape index: {}]   ;;  %s1070_s4 = inlined_call_operand.vmem [shape: f32[1,256], index: 4, kind: input, shape index: {}]   ;;  %s1071_s5 = inlined_call_operand.vmem [shape: f32[2,1,256], index: 5, kind: output, shape index: {}]  }
   0x1 LB: > { %s613_s19 = sadd.s32 4294967295, %s811_s18   ;;  %p617_p0 = scmp.ge.s32.totalorder %s811_s18, 1  ;;  %s811_s18 = sphi %s843_s18, %s15_s18  }
   0x2   : > { %p197_p1 = scmp.lt.s32.totalorder %s811_s18, 3 }
   0x4   : > { %p198_p2 = pnand %p617_p0, %p197_p1 }
   0x5   : > { %p229_p3 = scmp.lt.s32.totalorder (!%p198_p2), %s613_s19, 1 }
   0x6   : > { %201 = sbr.rel (%p198_p2) target bundleno = 213 (0xd5), region = 40 }
   0xb   : > { %v685_v0 = vld [vmem:[%s1069_s3 + $0x70] sm:$0xf]  ;;  %v796_v1 = vld [vmem:[%s1069_s3 + $0x74] sm:$0xf0]  ;;  %v795_v2 = vld [vmem:[%s1069_s3 + $0x74] sm:$0xf] }
   0xc   : > { %v686_v3 = vor.u32 %v796_v1, %v685_v0  ;;  %v687_v4 = vld [vmem:[%s1069_s3 + $0x78] sm:$0xf0]  ;;  %v753_v5 = vld [vmem:[%s1068_s2 + $0x70] sm:$0xf]  ;;  %v779_v6 = vld [vmem:[%s1068_s2 + $0x74] sm:$0xf0] }
   0xd   : > { %v690_v7 = vor.u32 %v795_v2, %v687_v4  ;;  %v754_v8 = vor.u32 %v779_v6, %v753_v5  ;;  %v778_v9 = vld [vmem:[%s1068_s2 + $0x74] sm:$0xf]  ;;  %v755_v10 = vld [vmem:[%s1068_s2 + $0x78] sm:$0xf0]  ;;  %v677_v11 = vld [vmem:[%s1069_s3 + $0x60] sm:$0xf] }
   0xe   : > { %365 = vmatpush.bf16.msra.mxu0 %v686_v3  ;;  %v758_v12 = vor.u32 %v778_v9, %v755_v10  ;;  %v794_v13 = vld [vmem:[%s1069_s3 + $0x64] sm:$0xf0]  ;;  %v793_v14 = vld [vmem:[%s1069_s3 + $0x64] sm:$0xf]  ;;  %v679_v15 = vld [vmem:[%s1069_s3 + $0x68] sm:$0xf0] }
   0xf   : > { %379 = vmatpush.bf16.msra.mxu1 %v690_v7  ;;  %479 = vmatpush.bf16.msra.mxu2 %v754_v8  ;;  %v678_v16 = vor.u32 %v794_v13, %v677_v11  ;;  %v682_v17 = vor.u32 %v793_v14, %v679_v15  ;;  %v745_v18 = vld [vmem:[%s1068_s2 + $0x60] sm:$0xf]  ;;  %v777_v19 = vld [vmem:[%s1068_s2 + $0x64] sm:$0xf0]  ;;  %v776_v20 = vld [vmem:[%s1068_s2 + $0x64] sm:$0xf] }
  0x10   : > { %493 = vmatpush.bf16.msra.mxu3 %v758_v12  ;;  %v746_v21 = vor.u32 %v777_v19, %v745_v18  ;;  %v747_v22 = vld [vmem:[%s1068_s2 + $0x68] sm:$0xf0]  ;;  %v669_v23 = vld [vmem:[%s1069_s3 + $0x50] sm:$0xf]  ;;  %v792_v24 = vld [vmem:[%s1069_s3 + $0x54] sm:$0xf0] }
  0x11   : > { %v750_v25 = vor.u32 %v776_v20, %v747_v22  ;;  %v791_v26 = vld [vmem:[%s1069_s3 + $0x54] sm:$0xf]  ;;  %v671_v27 = vld [vmem:[%s1069_s3 + $0x58] sm:$0xf0]  ;;  %v737_v28 = vld [vmem:[%s1068_s2 + $0x50] sm:$0xf]  ;;  %v670_v29 = vor.u32 %v792_v24, %v669_v23 }
  0x12   : > { %366 = vmatpush.bf16.msra.mxu0 %v678_v16  ;;  %v775_v30 = vld [vmem:[%s1068_s2 + $0x54] sm:$0xf0]  ;;  %v774_v31 = vld [vmem:[%s1068_s2 + $0x54] sm:$0xf]  ;;  %v739_v32 = vld [vmem:[%s1068_s2 + $0x58] sm:$0xf0]  ;;  %v674_v33 = vor.u32 %v791_v26, %v671_v27 }
  0x13   : > { %380 = vmatpush.bf16.msra.mxu1 %v682_v17  ;;  %480 = vmatpush.bf16.msra.mxu2 %v746_v21  ;;  %v738_v34 = vor.u32 %v775_v30, %v737_v28  ;;  %v661_v35 = vld [vmem:[%s1069_s3 + $0x40] sm:$0xf]  ;;  %v790_v36 = vld [vmem:[%s1069_s3 + $0x44] sm:$0xf0]  ;;  %v789_v37 = vld [vmem:[%s1069_s3 + $0x44] sm:$0xf]  ;;  %v742_v38 = vor.u32 %v774_v31, %v739_v32 }
  0x14   : > { %494 = vmatpush.bf16.msra.mxu3 %v750_v25  ;;  %v663_v39 = vld [vmem:[%s1069_s3 + $0x48] sm:$0xf0]  ;;  %v729_v40 = vld [vmem:[%s1068_s2 + $0x40] sm:$0xf]  ;;  %v773_v41 = vld [vmem:[%s1068_s2 + $0x44] sm:$0xf0]  ;;  %v662_v44 = vor.u32 %v790_v36, %v661_v35 }
  0x15   : > { %v772_v42 = vld [vmem:[%s1068_s2 + $0x44] sm:$0xf]  ;;  %v731_v43 = vld [vmem:[%s1068_s2 + $0x48] sm:$0xf0]  ;;  %v666_v45 = vor.u32 %v789_v37, %v663_v39  ;;  %v730_v46 = vor.u32 %v773_v41, %v729_v40  ;;  %v653_v47 = vld [vmem:[%s1069_s3 + $0x30] sm:$0xf] }
  0x16   : > { %367 = vmatpush.bf16.msra.mxu0 %v670_v29  ;;  %v788_v48 = vld [vmem:[%s1069_s3 + $0x34] sm:$0xf0]  ;;  %v787_v49 = vld [vmem:[%s1069_s3 + $0x34] sm:$0xf]  ;;  %v734_v50 = vor.u32 %v772_v42, %v731_v43  ;;  %v655_v51 = vld [vmem:[%s1069_s3 + $0x38] sm:$0xf0] }
  0x17   : > { %381 = vmatpush.bf16.msra.mxu1 %v674_v33  ;;  %481 = vmatpush.bf16.msra.mxu2 %v738_v34  ;;  %v721_v52 = vld [vmem:[%s1068_s2 + $0x30] sm:$0xf]  ;;  %v771_v53 = vld [vmem:[%s1068_s2 + $0x34] sm:$0xf0]  ;;  %v770_v54 = vld [vmem:[%s1068_s2 + $0x34] sm:$0xf]  ;;  %v654_v56 = vor.u32 %v788_v48, %v653_v47  ;;  %v658_v57 = vor.u32 %v787_v49, %v655_v51 }
  0x18   : > { %495 = vmatpush.bf16.msra.mxu3 %v742_v38  ;;  %v723_v55 = vld [vmem:[%s1068_s2 + $0x38] sm:$0xf0]  ;;  %v722_v58 = vor.u32 %v771_v53, %v721_v52  ;;  %v645_v59 = vld [vmem:[%s1069_s3 + $0x20] sm:$0xf]  ;;  %v786_v60 = vld [vmem:[%s1069_s3 + $0x24] sm:$0xf0] }
  0x19   : > { %v785_v61 = vld [vmem:[%s1069_s3 + $0x24] sm:$0xf]  ;;  %v726_v62 = vor.u32 %v770_v54, %v723_v55  ;;  %v647_v63 = vld [vmem:[%s1069_s3 + $0x28] sm:$0xf0]  ;;  %v713_v0 = vld [vmem:[%s1068_s2 + $0x20] sm:$0xf]  ;;  %v646_v4 = vor.u32 %v786_v60, %v645_v59 }
  0x1a   : > { %368 = vmatpush.bf16.msra.mxu0 %v662_v44  ;;  %v769_v1 = vld [vmem:[%s1068_s2 + $0x24] sm:$0xf0]  ;;  %v768_v2 = vld [vmem:[%s1068_s2 + $0x24] sm:$0xf]  ;;  %v715_v3 = vld [vmem:[%s1068_s2 + $0x28] sm:$0xf0]  ;;  %v650_v6 = vor.u32 %v785_v61, %v647_v63 }
  0x1b   : > { %382 = vmatpush.bf16.msra.mxu1 %v666_v45  ;;  %482 = vmatpush.bf16.msra.mxu2 %v730_v46  ;;  %v637_v5 = vld [vmem:[%s1069_s3 + $0x10] sm:$0xf]  ;;  %v714_v7 = vor.u32 %v769_v1, %v713_v0  ;;  %v784_v8 = vld [vmem:[%s1069_s3 + $0x14] sm:$0xf0]  ;;  %v783_v9 = vld [vmem:[%s1069_s3 + $0x14] sm:$0xf]  ;;  %v718_v11 = vor.u32 %v768_v2, %v715_v3 }
  0x1c   : > { %496 = vmatpush.bf16.msra.mxu3 %v734_v50  ;;  %v639_v10 = vld [vmem:[%s1069_s3 + $0x18] sm:$0xf0]  ;;  %v705_v12 = vld [vmem:[%s1068_s2 + $0x10] sm:$0xf]  ;;  %v767_v13 = vld [vmem:[%s1068_s2 + $0x14] sm:$0xf0]  ;;  %v638_v16 = vor.u32 %v784_v8, %v637_v5 }
  0x1d   : > { %v766_v14 = vld [vmem:[%s1068_s2 + $0x14] sm:$0xf]  ;;  %v707_v15 = vld [vmem:[%s1068_s2 + $0x18] sm:$0xf0]  ;;  %v629_v17 = vld [vmem:[%s1069_s3] sm:$0xf]  ;;  %v642_v18 = vor.u32 %v783_v9, %v639_v10  ;;  %v706_v19 = vor.u32 %v767_v13, %v705_v12 }
  0x1e   : > { %369 = vmatpush.bf16.msra.mxu0 %v654_v56  ;;  %s1073_s19 = smov (!%p229_p3, %s613_s19), 1  ;;  %v782_v20 = vld [vmem:[%s1069_s3 + $0x4] sm:$0xf0]  ;;  %v781_v21 = vld [vmem:[%s1069_s3 + $0x4] sm:$0xf]  ;;  %v710_v23 = vor.u32 %v766_v14, %v707_v15  ;;  %vm540_vm0 = vcmask 1040384  }
  0x1f   : > { %383 = vmatpush.bf16.msra.mxu1 %v658_v57  ;;  %483 = vmatpush.bf16.msra.mxu2 %v722_v58  ;;  %v631_v22 = vld [vmem:[%s1069_s3 + $0x8] sm:$0xf0]  ;;  %v697_v24 = vld [vmem:[%s1068_s2] sm:$0xf]  ;;  %v765_v25 = vld [vmem:[%s1068_s2 + $0x4] sm:$0xf0]  ;;  %v630_v28 = vor.u32 %v782_v20, %v629_v17 }
  0x20   : > { %497 = vmatpush.bf16.msra.mxu3 %v726_v62  ;;  %s761_s29 = sshll.u32 %s1073_s19, 3  ;;  %v764_v26 = vld [vmem:[%s1068_s2 + $0x4] sm:$0xf]  ;;  %v699_v27 = vld [vmem:[%s1068_s2 + $0x8] sm:$0xf0]  ;;  %v634_v29 = vor.u32 %v781_v21, %v631_v22  ;;  %v698_v30 = vor.u32 %v765_v25, %v697_v24  ;;  %s622_s17 = sshll.u32 %s1073_s19, 1 }
  0x21   : > { %s238_s11 = scalar_lea.vmem %s1067_s1, %s761_s29  ;;  %s233_s14 = scalar_lea.vmem %s1066_s0, %s761_s29  ;;  %v702_v31 = vor.u32 %v764_v26, %v699_v27  ;;  %v507_v38 = vld [vmem:[%s1070_s4] sm:$0x3] }
  0x22   : > { %370 = vmatpush.bf16.msra.mxu0 %v646_v4  ;;  %v780_v32 = vld [vmem:[%s238_s11] sm:$0xff]  ;;  %v509_v40 = vperm.slane %v507_v38, 0  ;;  %v510_v42 = vperm.slane %v507_v38, 1  ;;  %s242_s22 = scalar_lea.vmem %s1071_s5, %s622_s17 }
  0x23   : > { %384 = vmatpush.bf16.msra.mxu1 %v650_v6  ;;  %484 = vmatpush.bf16.msra.mxu2 %v714_v7  ;;  %v763_v33 = vld [vmem:[%s233_s14] sm:$0xff]  ;;  %v543_v7 = vlaneseq }
  0x24   : > { %498 = vmatpush.bf16.msra.mxu3 %v718_v11 }
  0x25   : > { %vm545_vm1 = vcmp.lt.s32.totalorder %v543_v7, 256 }
  0x26   : > { %371 = vmatpush.bf16.msra.mxu0 %v638_v16 }
  0x27   : > { %385 = vmatpush.bf16.msra.mxu1 %v642_v18  ;;  %485 = vmatpush.bf16.msra.mxu2 %v706_v19 }
  0x28   : > { %499 = vmatpush.bf16.msra.mxu3 %v710_v23 }
  0x2a   : > { %372 = vmatpush.bf16.msra.mxu0 %v630_v28 }
  0x2b   : > { %386 = vmatpush.bf16.msra.mxu1 %v634_v29  ;;  %486 = vmatpush.bf16.msra.mxu2 %v698_v30 }
  0x2c   : > { %500 = vmatpush.bf16.msra.mxu3 %v702_v31 }
  0x2d   : > { %373 = vmatmul.bf16.vlgmr.msra.gmra.mxu0 %v780_v32 }
  0x2e   : > { %387 = vmatmul.bf16.vlgmr.msra.gmra.mxu1 %v780_v32  ;;  %487 = vmatmul.bf16.vlgmr.msra.gmra.mxu2 %v763_v33 }
  0x2f   : > { %501 = vmatmul.bf16.vlgmr.msra.gmra.mxu3 %v763_v33 }
  0xaa   : > { %v374_v34 = vpop.f32.mrf.mxu0 }
  0xab   : > { %v388_v35 = vpop.f32.mrf.mxu1 }
  0xb1   : > { %v488_v36 = vpop.f32.mrf.mxu2 }
  0xb2   : > { %v502_v37 = vpop.f32.mrf.mxu3  ;;  %v489_v39 = vadd.f32 %v488_v36, %v374_v34  ;;  %v376_v43 = vpop.f32.mrf.mxu0 }
  0xb3   : > { %v503_v41 = vadd.f32 %v502_v37, %v388_v35  ;;  %v390_v46 = vpop.f32.mrf.mxu1 }
  0xb4   : > { %v513_v45 = vadd.f32 %v509_v40, %v489_v39 }
  0xb5   : > { %v514_v49 = vadd.f32 %v510_v42, %v503_v41 }
  0xb6   : > { %v517_v53 = vmax.f32 %v513_v45, 0.0 }
  0xb7   : > { %v518_v55 = vmax.f32 %v514_v49, 0.0 }
  0xb9   : > { %v490_v44 = vpop.f32.mrf.mxu2 }
  0xba   : > { %v491_v47 = vadd.f32 %v490_v44, %v376_v43  ;;  %v504_v48 = vpop.f32.mrf.mxu3 }
  0xbb   : > { %v505_v50 = vadd.f32 %v504_v48, %v390_v46 }
  0xbc   : > { %v515_v51 = vadd.f32 %v509_v40, %v491_v47 }
  0xbd   : > { %v516_v52 = vadd.f32 %v510_v42, %v505_v50 }
  0xbe   : > { %v519_v54 = vmax.f32 %v515_v51, 0.0 }
  0xbf   : > { %v520_v56 = vmax.f32 %v516_v52, 0.0 }
  0xc0   : > { %v521_v57 = vadd.f32 %v519_v54, %v517_v53 }
  0xc1   : > { %v528_v58 = vadd.f32 %v520_v56, %v518_v55 }
  0xc2   : > { %v522_v59 = vrot.slane %v521_v57, 4 }
  0xc3   : > { %v529_v60 = vrot.slane %v528_v58, 4 }
  0xc4   : > { %v523_v61 = vadd.f32 %v522_v59, %v521_v57 }
  0xc5   : > { %v530_v62 = vadd.f32 %v529_v60, %v528_v58 }
  0xc6   : > { %v524_v63 = vrot.slane %v523_v61, 2 }
  0xc7   : > { %v531_v0 = vrot.slane %v530_v62, 2 }
  0xc8   : > { %v525_v1 = vadd.f32 %v524_v63, %v523_v61 }
  0xc9   : > { %v532_v2 = vadd.f32 %v531_v0, %v530_v62 }
  0xca   : > { %v526_v3 = vrot.slane %v525_v1, 1 }
  0xcb   : > { %v533_v4 = vrot.slane %v532_v2, 1 }
  0xcc   : > { %v527_v5 = vadd.f32 %v526_v3, %v525_v1 }
  0xcd   : > { %v534_v6 = vadd.f32 %v533_v4, %v532_v2 }
  0xce   : > { %v535_v9 = vmul.f32 0.0625, %v527_v5 }
  0xcf   : > { %v536_v8 = vmul.f32 0.0625, %v534_v6 }
  0xd1   : > { %v539_v10 = vrot.slane %v536_v8, 7 }
  0xd3   : > { %v541_v11 = vsel %vm540_vm0, %v535_v9, %v539_v10 }
  0xd4   : > { %547 = vst.msk [vmem:[%s242_s22] sm:$0x3] %vm545_vm1, %v541_v11 }
  0xd5 PF: > { %s15_s18 = sadd.s32 1, %s811_s18  }
  0xd6   : > { %p12_p4 = scmp.ge.s32.totalorder %s15_s18, 4  }
  0xd8   :  { %14 = sbr.rel (!%p12_p4) target bundleno = 1 (0x1), region = 73 }

</bundles_post_ra>
